<compile_context>
chip_gen: v6e
topology: v6e:2x2x1
jax: 0.10.0
libtpu: 0.0.40
codegen_flags: <defaults>
</compile_context>

<pallas_src>
import math
import jax
import jax.numpy as jnp
from jax import lax
from jax.experimental import pallas as pl
from jax.experimental.pallas import tpu as pltpu
import numpy as np

# ---- module hyper-parameters (scaled-down, same structure as the original) ----
BATCH_SIZE = 2
EMBED_SIZE = 256
NUM_HEADS = 4
DK = EMBED_SIZE // NUM_HEADS          # 64
DV = EMBED_SIZE // NUM_HEADS          # 64
SEQ = 16
SCALE = 1.0 / math.sqrt(DK)           # 0.125 (exact in bf16/f32)
LN_EPS = 1e-5

# TODO(synk): nn.Dropout(0.4) is treated as identity (eval/inference mode);
# training-mode dropout would need pltpu.prng_seed / prng_random_bits.


def attn_mh_kernel(q_ref, k_ref, v_ref, mg_ref, w_ref, p_ref, out_ref):
    """One grid step == `nb` batch elements (nb = block batch size).

    q_ref : (nb, S, E) f32      — residual source + Q projection input
    k_ref : (nb, S, E) bf16     — K projection input
    v_ref : (nb, S, E) bf16     — V projection input
    mg_ref: (2, nb, S, S) f32   — [0]=additive mask, [1]=group_prob
    w_ref : (E, 4E) bf16        — packed [Wq | Wk | Wv | Wo]
    p_ref : (6, E) f32          — packed [bq, bk, bv, bo, gamma, beta]
    """
    nb, s, e = q_ref.shape
    rows = nb * s
    f32 = jnp.float32

    # Residual source / projection inputs, flattened to (rows, e).
    x = q_ref[...].reshape(rows, e)            # f32 (residual + LN stay f32)
    x_bf = x.astype(jnp.bfloat16)
    kx = k_ref[...].reshape(rows, e)           # already bf16
    vx = v_ref[...].reshape(rows, e)           # already bf16

    # Packed small params (sublane-broadcast (1, E) rows).
    bq, bk, bv = p_ref[0:1], p_ref[1:2], p_ref[2:3]
    bo, gamma, beta = p_ref[3:4], p_ref[4:5], p_ref[5:6]

    # --- QKV projections against the resident weight slab (256-aligned slices,
    # bf16 MXU matmuls, f32 accumulation). f32 temporaries die after the casts.
    q_proj = jnp.dot(x_bf, w_ref[:, 0:e],       preferred_element_type=f32) + bq
    k_proj = jnp.dot(kx,   w_ref[:, e:2 * e],   preferred_element_type=f32) + bk
    v_proj = jnp.dot(vx,   w_ref[:, 2 * e:3 * e], preferred_element_type=f32) + bv

    # Fold 1/sqrt(DK) into Q once; single bf16 cast per tensor (hoisted).
    q_bf = (q_proj * SCALE).astype(jnp.bfloat16)
    k_bf = k_proj.astype(jnp.bfloat16)
    v_bf = v_proj.astype(jnp.bfloat16)

    y_rows = []
    for b in range(nb):                       # static loop, unrolled
        r0 = b * s
        mask_add = mg_ref[0, b]               # (s, s) additive mask, f32
        gp = mg_ref[1, b]                     # (s, s) group_prob, f32
        y_b = jnp.zeros((s, e), f32)          # per-batch Wo accumulator (f32)
        for h in range(NUM_HEADS):            # static loop, unrolled
            c0 = h * DK
            qh = q_bf[r0:r0 + s, c0:c0 + DK]  # (s, DK) bf16
            kh = k_bf[r0:r0 + s, c0:c0 + DK]
            vh = v_bf[r0:r0 + s, c0:c0 + DV]

            # scores = q @ k^T : contract last dims, no materialized transpose.
            a = lax.dot_general(qh, kh, (((1,), (1,)), ((), ())),
                                preferred_element_type=f32)
            a = a + mask_add                  # additive mask (== masked_fill -1e9)

            # softmax (f32) over the key axis
            a_max = jnp.max(a, axis=-1, keepdims=True)
            p = jnp.exp(a - a_max)
            p = p * pl.reciprocal(jnp.sum(p, axis=-1, keepdims=True), approx=True)

            # group_prob modulation (broadcast over heads)
            p = p * gp

            # per-head attention output, immediately folded through Wo:
            #   y += z_h @ Wo[h*DV:(h+1)*DV, :]
            # Row slices of the Wo slab are sublane-aligned -> no lane relayout
            # (replaces the former 64-lane-offset concat + one big Wo matmul).
            z = jnp.dot(p.astype(jnp.bfloat16), vh, preferred_element_type=f32)
            wo_h = w_ref[c0:c0 + DV, 3 * e:4 * e]          # (DV, E) bf16
            y_b = y_b + jnp.dot(z.astype(jnp.bfloat16), wo_h,
                                preferred_element_type=f32)
        y_rows.append(y_b)

    # Row concat is sublane-aligned (16-row blocks) -> cheap.
    y = jnp.concatenate(y_rows, axis=0) if nb > 1 else y_rows[0]

    # residual (dropout == identity) + output bias + LayerNorm (f32)
    res = x + y + bo
    mean = jnp.mean(res, axis=-1, keepdims=True)
    cen = res - mean
    var = jnp.mean(cen * cen, axis=-1, keepdims=True)
    out = cen * lax.rsqrt(var + LN_EPS) * gamma + beta
    # NOTE(v5e): emitting bf16 here would halve writeback on the single vst
    # slot; kept f32 because downstream (the test) compares against f32.
    out_ref[...] = out.reshape(nb, s, e).astype(out_ref.dtype)


def _default_batch_per_step(batch):
    """v7x has 2 TensorCores/chip -> keep a parallel batch grid (1 elem/core).
    v5e/v6e are single-core -> fuse the whole batch into one grid step."""
    try:
        kind = jax.devices()[0].device_kind.lower()
    except Exception:
        kind = ""
    if "v7" in kind or "7x" in kind:
        return 1
    return batch


def attn_mh_forward(q, k, v, mask, group_prob, params, batch_per_step=None):
    (wq, bq, wk, bk, wv, bv, wo, bo, gamma, beta) = params
    B, S, E = q.shape
    nb = batch_per_step if batch_per_step is not None else _default_batch_per_step(B)
    assert B % nb == 0
    grid = (B // nb,)

    # Additive mask + group_prob packed into one (2, B, S, S) f32 input.
    mask_add = jnp.where(mask[:, 0] == 0, jnp.float32(-1000000000.0), jnp.float32(0.0))
    mg = jnp.stack([mask_add, group_prob.astype(jnp.float32)], axis=0)

    # One bf16 weight slab + one f32 small-params array (1+1 DMA descriptors
    # instead of 8; halves the dominant weight transfer vs f32).
    w_all = jnp.concatenate([wq, wk, wv, wo], axis=1).astype(jnp.bfloat16)   # (E, 4E)
    p_all = jnp.concatenate([bq, bk, bv, bo, gamma, beta], axis=0).astype(jnp.float32)  # (6, E)

    # k / v only feed bf16 MXU matmuls -> ship them as bf16 (q stays f32: residual).
    k_bf = k.astype(jnp.bfloat16)
    v_bf = v.astype(jnp.bfloat16)

    seq_spec = pl.BlockSpec((nb, S, E), lambda b: (b, 0, 0))
    mg_spec = pl.BlockSpec((2, nb, S, S), lambda b: (0, b, 0, 0))
    # Constant index maps -> Pallas does not re-DMA these blocks between steps.
    w_spec = pl.BlockSpec((E, 4 * E), lambda b: (0, 0))
    p_spec = pl.BlockSpec((6, E), lambda b: (0, 0))

    # Advisory cost estimate (this kernel is embedded in a larger graph).
    flops = int(2 * B * S * E * (3 * E)                      # QKV projections
                + 2 * B * NUM_HEADS * S * S * (DK + DV)      # scores + P@V
                + 2 * B * S * E * E)                         # output projection
    transcendentals = int(B * NUM_HEADS * S * S)
    bytes_accessed = int(q.size * 4 + k_bf.size * 2 + v_bf.size * 2
                         + mg.size * 4 + w_all.size * 2 + p_all.size * 4
                         + B * S * E * 4)

    return pl.pallas_call(
        attn_mh_kernel,
        out_shape=jax.ShapeDtypeStruct((B, S, E), jnp.float32),
        grid_spec=pltpu.PrefetchScalarGridSpec(
            num_scalar_prefetch=0,
            grid=grid,
            in_specs=[
                seq_spec,            # q (f32)
                seq_spec,            # k (bf16)
                seq_spec,            # v (bf16)
                mg_spec,             # [mask_add, group_prob]
                w_spec,              # packed [Wq|Wk|Wv|Wo] bf16
                p_spec,              # packed [bq,bk,bv,bo,gamma,beta] f32
            ],
            out_specs=seq_spec,
        ),
        compiler_params=pltpu.CompilerParams(
            dimension_semantics=("parallel",)),
        cost_estimate=pl.CostEstimate(flops=flops,
                                      transcendentals=transcendentals,
                                      bytes_accessed=bytes_accessed),
    )(q, k_bf, v_bf, mg, w_all, p_all)


def reference_forward(q, k, v, mask, group_prob, params):
    """Pure-JAX f32 reference matching the PyTorch semantics (eval mode)."""
    (wq, bq, wk, bk, wv, bv, wo, bo, gamma, beta) = params
    B, S, E = q.shape
    x = q

    def split_heads(t):
        return t.reshape(B, S, NUM_HEADS, DK).transpose(0, 2, 1, 3)   # (B,H,S,DK)

    qh = split_heads(q @ wq + bq[0])
    kh = split_heads(k @ wk + bk[0])
    vh = split_heads(v @ wv + bv[0])
    a = jnp.einsum("bhqd,bhkd->bhqk", qh, kh) / math.sqrt(DK)
    a = jnp.where(mask == 0, -1000000000.0, a)
    a = jax.nn.softmax(a, axis=-1)
    a = a * group_prob[:, None, :, :]
    z = jnp.einsum("bhqk,bhkd->bhqd", a, vh)
    z = z.transpose(0, 2, 1, 3).reshape(B, S, NUM_HEADS * DV)
    z = z @ wo + bo[0]
    res = x + z
    mean = jnp.mean(res, axis=-1, keepdims=True)
    var = jnp.mean((res - mean) ** 2, axis=-1, keepdims=True)
    return (res - mean) / jnp.sqrt(var + LN_EPS) * gamma[0] + beta[0]


if __name__ == "__main__":
    key = jax.random.PRNGKey(0)
    keys = jax.random.split(key, 16)

    # --- deterministic parameter init (PyTorch Linear-style uniform bound) ---
    bound = 1.0 / math.sqrt(EMBED_SIZE)

    def lin(kw, kb):
        w = jax.random.uniform(kw, (EMBED_SIZE, EMBED_SIZE), jnp.float32, -bound, bound)
        b = jax.random.uniform(kb, (1, EMBED_SIZE), jnp.float32, -bound, bound)
        return w, b

    wq, bq = lin(keys[0], keys[1])
    wk, bk = lin(keys[2], keys[3])
    wv, bv = lin(keys[4], keys[5])
    wo, bo = lin(keys[6], keys[7])
    gamma = jnp.ones((1, EMBED_SIZE), jnp.float32)
    beta = jnp.zeros((1, EMBED_SIZE), jnp.float32)
    params = (wq, bq, wk, bk, wv, bv, wo, bo, gamma, beta)

    # --- deterministic inputs ---
    q = jax.random.normal(keys[8], (BATCH_SIZE, SEQ, EMBED_SIZE), jnp.float32)
    k = jax.random.normal(keys[9], (BATCH_SIZE, SEQ, EMBED_SIZE), jnp.float32)
    v = jax.random.normal(keys[10], (BATCH_SIZE, SEQ, EMBED_SIZE), jnp.float32)
    # causal mask, broadcast over heads: (B, 1, S, S)
    causal = jnp.tril(jnp.ones((SEQ, SEQ), jnp.float32))
    mask = jnp.broadcast_to(causal, (BATCH_SIZE, 1, SEQ, SEQ))
    # group_prob: positive, row-normalized (B, S, S)
    gp_raw = jax.random.uniform(keys[11], (BATCH_SIZE, SEQ, SEQ), jnp.float32, 0.1, 1.0)
    group_prob = gp_raw / jnp.sum(gp_raw, axis=-1, keepdims=True)

    out = attn_mh_forward(q, k, v, mask, group_prob, params)
    out = jax.block_until_ready(out)

    ref = reference_forward(q, k, v, mask, group_prob, params)
    # bf16 matmul operands + approx reciprocal -> compare to the f32 reference
    # with a mixed-precision tolerance (observed error ~1e-3).
    np.testing.assert_allclose(np.asarray(out), np.asarray(ref), rtol=2e-2, atol=2e-2)

    print("KERNEL_OK")
</pallas_src>

<mosaic_0001>
module attributes {stable_mosaic.version = 11 : i64} {
  func.func @attn_mh_kernel(%arg0: i32, %arg1: memref<2x16x256xf32, #tpu.memory_space<vmem>>, %arg2: memref<2x16x256xbf16, #tpu.memory_space<vmem>>, %arg3: memref<2x16x256xbf16, #tpu.memory_space<vmem>>, %arg4: memref<2x2x16x16xf32, #tpu.memory_space<vmem>>, %arg5: memref<256x1024xbf16, #tpu.memory_space<vmem>>, %arg6: memref<6x256xf32, #tpu.memory_space<vmem>>, %arg7: memref<2x16x256xf32, #tpu.memory_space<vmem>>) attributes {dimension_semantics = [#tpu.dimension_semantics<parallel>], iteration_bounds = array<i64: 1>, scalar_prefetch = 0 : i64, scratch_operands = 0 : i64, tpu.core_type = #tpu.core_type<tc>, window_params = [{transform_indices = @transform_0, window_bounds = array<i64: 2, 16, 256>}, {transform_indices = @transform_1, window_bounds = array<i64: 2, 16, 256>}, {transform_indices = @transform_2, window_bounds = array<i64: 2, 16, 256>}, {transform_indices = @transform_3, window_bounds = array<i64: 2, 2, 16, 16>}, {pipeline_mode = #tpu.pipeline_mode<synchronous>, transform_indices = @transform_4, window_bounds = array<i64: 256, 1024>}, {pipeline_mode = #tpu.pipeline_mode<synchronous>, transform_indices = @transform_5, window_bounds = array<i64: 6, 256>}, {transform_indices = @transform_6, window_bounds = array<i64: 2, 16, 256>}]} {
    %c0 = arith.constant 0 : index
    %c0_0 = arith.constant 0 : index
    %c0_1 = arith.constant 0 : index
    %0 = vector.load %arg1[%c0, %c0_0, %c0_1] : memref<2x16x256xf32, #tpu.memory_space<vmem>>, vector<2x16x256xf32>
    %1 = vector.shape_cast %0 : vector<2x16x256xf32> to vector<32x256xf32>
    %2 = arith.truncf %1 : vector<32x256xf32> to vector<32x256xbf16>
    %c0_2 = arith.constant 0 : index
    %c0_3 = arith.constant 0 : index
    %c0_4 = arith.constant 0 : index
    %3 = vector.load %arg2[%c0_2, %c0_3, %c0_4] : memref<2x16x256xbf16, #tpu.memory_space<vmem>>, vector<2x16x256xbf16>
    %4 = vector.shape_cast %3 : vector<2x16x256xbf16> to vector<32x256xbf16>
    %c0_5 = arith.constant 0 : index
    %c0_6 = arith.constant 0 : index
    %c0_7 = arith.constant 0 : index
    %5 = vector.load %arg3[%c0_5, %c0_6, %c0_7] : memref<2x16x256xbf16, #tpu.memory_space<vmem>>, vector<2x16x256xbf16>
    %6 = vector.shape_cast %5 : vector<2x16x256xbf16> to vector<32x256xbf16>
    %c0_8 = arith.constant 0 : index
    %c0_9 = arith.constant 0 : index
    %7 = vector.load %arg6[%c0_8, %c0_9] : memref<6x256xf32, #tpu.memory_space<vmem>>, vector<1x256xf32>
    %c1 = arith.constant 1 : index
    %c0_10 = arith.constant 0 : index
    %8 = vector.load %arg6[%c1, %c0_10] : memref<6x256xf32, #tpu.memory_space<vmem>>, vector<1x256xf32>
    %c2 = arith.constant 2 : index
    %c0_11 = arith.constant 0 : index
    %9 = vector.load %arg6[%c2, %c0_11] : memref<6x256xf32, #tpu.memory_space<vmem>>, vector<1x256xf32>
    %c3 = arith.constant 3 : index
    %c0_12 = arith.constant 0 : index
    %10 = vector.load %arg6[%c3, %c0_12] : memref<6x256xf32, #tpu.memory_space<vmem>>, vector<1x256xf32>
    %c4 = arith.constant 4 : index
    %c0_13 = arith.constant 0 : index
    %11 = vector.load %arg6[%c4, %c0_13] : memref<6x256xf32, #tpu.memory_space<vmem>>, vector<1x256xf32>
    %c5 = arith.constant 5 : index
    %c0_14 = arith.constant 0 : index
    %12 = vector.load %arg6[%c5, %c0_14] : memref<6x256xf32, #tpu.memory_space<vmem>>, vector<1x256xf32>
    %c0_15 = arith.constant 0 : index
    %c0_16 = arith.constant 0 : index
    %13 = vector.load %arg5[%c0_15, %c0_16] : memref<256x1024xbf16, #tpu.memory_space<vmem>>, vector<256x256xbf16>
    %cst = arith.constant dense<0.000000e+00> : vector<32x256xf32>
    %14 = tpu.matmul %2, %13, %cst {dimension_numbers = #tpu.dot_dimension_numbers<[1], [0], [0], [1], [0, 0, 1, 1], [], []>} : vector<32x256xbf16>, vector<256x256xbf16>, vector<32x256xf32> -> vector<32x256xf32>
    %15 = vector.broadcast %7 : vector<1x256xf32> to vector<32x256xf32>
    %16 = arith.addf %14, %15 : vector<32x256xf32>
    %c0_17 = arith.constant 0 : index
    %c256 = arith.constant 256 : index
    %17 = vector.load %arg5[%c0_17, %c256] : memref<256x1024xbf16, #tpu.memory_space<vmem>>, vector<256x256xbf16>
    %cst_18 = arith.constant dense<0.000000e+00> : vector<32x256xf32>
    %18 = tpu.matmul %4, %17, %cst_18 {dimension_numbers = #tpu.dot_dimension_numbers<[1], [0], [0], [1], [0, 0, 1, 1], [], []>} : vector<32x256xbf16>, vector<256x256xbf16>, vector<32x256xf32> -> vector<32x256xf32>
    %19 = vector.broadcast %8 : vector<1x256xf32> to vector<32x256xf32>
    %20 = arith.addf %18, %19 : vector<32x256xf32>
    %c0_19 = arith.constant 0 : index
    %c512 = arith.constant 512 : index
    %21 = vector.load %arg5[%c0_19, %c512] : memref<256x1024xbf16, #tpu.memory_space<vmem>>, vector<256x256xbf16>
    %cst_20 = arith.constant dense<0.000000e+00> : vector<32x256xf32>
    %22 = tpu.matmul %6, %21, %cst_20 {dimension_numbers = #tpu.dot_dimension_numbers<[1], [0], [0], [1], [0, 0, 1, 1], [], []>} : vector<32x256xbf16>, vector<256x256xbf16>, vector<32x256xf32> -> vector<32x256xf32>
    %23 = vector.broadcast %9 : vector<1x256xf32> to vector<32x256xf32>
    %24 = arith.addf %22, %23 : vector<32x256xf32>
    %cst_21 = arith.constant 1.250000e-01 : f32
    %25 = vector.broadcast %cst_21 : f32 to vector<32x256xf32>
    %26 = arith.mulf %16, %25 : vector<32x256xf32>
    %27 = arith.truncf %26 : vector<32x256xf32> to vector<32x256xbf16>
    %28 = arith.truncf %20 : vector<32x256xf32> to vector<32x256xbf16>
    %29 = arith.truncf %24 : vector<32x256xf32> to vector<32x256xbf16>
    %c0_22 = arith.constant 0 : index
    %c0_23 = arith.constant 0 : index
    %c0_24 = arith.constant 0 : index
    %c0_25 = arith.constant 0 : index
    %30 = vector.load %arg4[%c0_22, %c0_23, %c0_24, %c0_25] : memref<2x2x16x16xf32, #tpu.memory_space<vmem>>, vector<1x1x16x16xf32>
    %31 = vector.shape_cast %30 : vector<1x1x16x16xf32> to vector<16x16xf32>
    %c1_26 = arith.constant 1 : index
    %c0_27 = arith.constant 0 : index
    %c0_28 = arith.constant 0 : index
    %c0_29 = arith.constant 0 : index
    %32 = vector.load %arg4[%c1_26, %c0_27, %c0_28, %c0_29] : memref<2x2x16x16xf32, #tpu.memory_space<vmem>>, vector<1x1x16x16xf32>
    %33 = vector.shape_cast %32 : vector<1x1x16x16xf32> to vector<16x16xf32>
    %cst_30 = arith.constant 0.000000e+00 : f32
    %34 = vector.broadcast %cst_30 : f32 to vector<16x256xf32>
    %35 = vector.extract_strided_slice %27 {offsets = [0, 0], sizes = [16, 64], strides = [1, 1]} : vector<32x256xbf16> to vector<16x64xbf16>
    %36 = vector.extract_strided_slice %28 {offsets = [0, 0], sizes = [16, 64], strides = [1, 1]} : vector<32x256xbf16> to vector<16x64xbf16>
    %37 = vector.extract_strided_slice %29 {offsets = [0, 0], sizes = [16, 64], strides = [1, 1]} : vector<32x256xbf16> to vector<16x64xbf16>
    %cst_31 = arith.constant dense<0.000000e+00> : vector<16x16xf32>
    %38 = tpu.matmul %35, %36, %cst_31 {dimension_numbers = #tpu.dot_dimension_numbers<[1], [1], [0], [0], [0, 0, 1, 0], [], []>} : vector<16x64xbf16>, vector<16x64xbf16>, vector<16x16xf32> -> vector<16x16xf32>
    %39 = arith.addf %38, %31 : vector<16x16xf32>
    %cst_32 = arith.constant dense<0xFF800000> : vector<16xf32>
    %40 = vector.multi_reduction <maximumf>, %39, %cst_32 [1] : vector<16x16xf32> to vector<16xf32>
    %41 = vector.shape_cast %40 : vector<16xf32> to vector<16x1xf32>
    %42 = vector.broadcast %41 : vector<16x1xf32> to vector<16x16xf32>
    %43 = arith.subf %39, %42 : vector<16x16xf32>
    %44 = math.exp %43 : vector<16x16xf32>
    %cst_33 = arith.constant dense<0.000000e+00> : vector<16xf32>
    %45 = vector.multi_reduction <add>, %44, %cst_33 [1] : vector<16x16xf32> to vector<16xf32>
    %46 = vector.shape_cast %45 : vector<16xf32> to vector<16x1xf32>
    %47 = tpu.reciprocal %46 {approx = true} : vector<16x1xf32> -> vector<16x1xf32>
    %48 = vector.broadcast %47 : vector<16x1xf32> to vector<16x16xf32>
    %49 = arith.mulf %44, %48 : vector<16x16xf32>
    %50 = arith.mulf %49, %33 : vector<16x16xf32>
    %51 = arith.truncf %50 : vector<16x16xf32> to vector<16x16xbf16>
    %cst_34 = arith.constant dense<0.000000e+00> : vector<16x64xf32>
    %52 = tpu.matmul %51, %37, %cst_34 {dimension_numbers = #tpu.dot_dimension_numbers<[1], [0], [0], [1], [0, 0, 1, 1], [], []>} : vector<16x16xbf16>, vector<16x64xbf16>, vector<16x64xf32> -> vector<16x64xf32>
    %c0_35 = arith.constant 0 : index
    %c768 = arith.constant 768 : index
    %53 = vector.load %arg5[%c0_35, %c768] : memref<256x1024xbf16, #tpu.memory_space<vmem>>, vector<64x256xbf16>
    %54 = arith.truncf %52 : vector<16x64xf32> to vector<16x64xbf16>
    %cst_36 = arith.constant dense<0.000000e+00> : vector<16x256xf32>
    %55 = tpu.matmul %54, %53, %cst_36 {dimension_numbers = #tpu.dot_dimension_numbers<[1], [0], [0], [1], [0, 0, 1, 1], [], []>} : vector<16x64xbf16>, vector<64x256xbf16>, vector<16x256xf32> -> vector<16x256xf32>
    %56 = arith.addf %34, %55 : vector<16x256xf32>
    %57 = vector.extract_strided_slice %27 {offsets = [0, 64], sizes = [16, 64], strides = [1, 1]} : vector<32x256xbf16> to vector<16x64xbf16>
    %58 = vector.extract_strided_slice %28 {offsets = [0, 64], sizes = [16, 64], strides = [1, 1]} : vector<32x256xbf16> to vector<16x64xbf16>
    %59 = vector.extract_strided_slice %29 {offsets = [0, 64], sizes = [16, 64], strides = [1, 1]} : vector<32x256xbf16> to vector<16x64xbf16>
    %cst_37 = arith.constant dense<0.000000e+00> : vector<16x16xf32>
    %60 = tpu.matmul %57, %58, %cst_37 {dimension_numbers = #tpu.dot_dimension_numbers<[1], [1], [0], [0], [0, 0, 1, 0], [], []>} : vector<16x64xbf16>, vector<16x64xbf16>, vector<16x16xf32> -> vector<16x16xf32>
    %61 = arith.addf %60, %31 : vector<16x16xf32>
    %cst_38 = arith.constant dense<0xFF800000> : vector<16xf32>
    %62 = vector.multi_reduction <maximumf>, %61, %cst_38 [1] : vector<16x16xf32> to vector<16xf32>
    %63 = vector.shape_cast %62 : vector<16xf32> to vector<16x1xf32>
    %64 = vector.broadcast %63 : vector<16x1xf32> to vector<16x16xf32>
    %65 = arith.subf %61, %64 : vector<16x16xf32>
    %66 = math.exp %65 : vector<16x16xf32>
    %cst_39 = arith.constant dense<0.000000e+00> : vector<16xf32>
    %67 = vector.multi_reduction <add>, %66, %cst_39 [1] : vector<16x16xf32> to vector<16xf32>
    %68 = vector.shape_cast %67 : vector<16xf32> to vector<16x1xf32>
    %69 = tpu.reciprocal %68 {approx = true} : vector<16x1xf32> -> vector<16x1xf32>
    %70 = vector.broadcast %69 : vector<16x1xf32> to vector<16x16xf32>
    %71 = arith.mulf %66, %70 : vector<16x16xf32>
    %72 = arith.mulf %71, %33 : vector<16x16xf32>
    %73 = arith.truncf %72 : vector<16x16xf32> to vector<16x16xbf16>
    %cst_40 = arith.constant dense<0.000000e+00> : vector<16x64xf32>
    %74 = tpu.matmul %73, %59, %cst_40 {dimension_numbers = #tpu.dot_dimension_numbers<[1], [0], [0], [1], [0, 0, 1, 1], [], []>} : vector<16x16xbf16>, vector<16x64xbf16>, vector<16x64xf32> -> vector<16x64xf32>
    %c64 = arith.constant 64 : index
    %c768_41 = arith.constant 768 : index
    %75 = vector.load %arg5[%c64, %c768_41] : memref<256x1024xbf16, #tpu.memory_space<vmem>>, vector<64x256xbf16>
    %76 = arith.truncf %74 : vector<16x64xf32> to vector<16x64xbf16>
    %cst_42 = arith.constant dense<0.000000e+00> : vector<16x256xf32>
    %77 = tpu.matmul %76, %75, %cst_42 {dimension_numbers = #tpu.dot_dimension_numbers<[1], [0], [0], [1], [0, 0, 1, 1], [], []>} : vector<16x64xbf16>, vector<64x256xbf16>, vector<16x256xf32> -> vector<16x256xf32>
    %78 = arith.addf %56, %77 : vector<16x256xf32>
    %79 = vector.extract_strided_slice %27 {offsets = [0, 128], sizes = [16, 64], strides = [1, 1]} : vector<32x256xbf16> to vector<16x64xbf16>
    %80 = vector.extract_strided_slice %28 {offsets = [0, 128], sizes = [16, 64], strides = [1, 1]} : vector<32x256xbf16> to vector<16x64xbf16>
    %81 = vector.extract_strided_slice %29 {offsets = [0, 128], sizes = [16, 64], strides = [1, 1]} : vector<32x256xbf16> to vector<16x64xbf16>
    %cst_43 = arith.constant dense<0.000000e+00> : vector<16x16xf32>
    %82 = tpu.matmul %79, %80, %cst_43 {dimension_numbers = #tpu.dot_dimension_numbers<[1], [1], [0], [0], [0, 0, 1, 0], [], []>} : vector<16x64xbf16>, vector<16x64xbf16>, vector<16x16xf32> -> vector<16x16xf32>
    %83 = arith.addf %82, %31 : vector<16x16xf32>
    %cst_44 = arith.constant dense<0xFF800000> : vector<16xf32>
    %84 = vector.multi_reduction <maximumf>, %83, %cst_44 [1] : vector<16x16xf32> to vector<16xf32>
    %85 = vector.shape_cast %84 : vector<16xf32> to vector<16x1xf32>
    %86 = vector.broadcast %85 : vector<16x1xf32> to vector<16x16xf32>
    %87 = arith.subf %83, %86 : vector<16x16xf32>
    %88 = math.exp %87 : vector<16x16xf32>
    %cst_45 = arith.constant dense<0.000000e+00> : vector<16xf32>
    %89 = vector.multi_reduction <add>, %88, %cst_45 [1] : vector<16x16xf32> to vector<16xf32>
    %90 = vector.shape_cast %89 : vector<16xf32> to vector<16x1xf32>
    %91 = tpu.reciprocal %90 {approx = true} : vector<16x1xf32> -> vector<16x1xf32>
    %92 = vector.broadcast %91 : vector<16x1xf32> to vector<16x16xf32>
    %93 = arith.mulf %88, %92 : vector<16x16xf32>
    %94 = arith.mulf %93, %33 : vector<16x16xf32>
    %95 = arith.truncf %94 : vector<16x16xf32> to vector<16x16xbf16>
    %cst_46 = arith.constant dense<0.000000e+00> : vector<16x64xf32>
    %96 = tpu.matmul %95, %81, %cst_46 {dimension_numbers = #tpu.dot_dimension_numbers<[1], [0], [0], [1], [0, 0, 1, 1], [], []>} : vector<16x16xbf16>, vector<16x64xbf16>, vector<16x64xf32> -> vector<16x64xf32>
    %c128 = arith.constant 128 : index
    %c768_47 = arith.constant 768 : index
    %97 = vector.load %arg5[%c128, %c768_47] : memref<256x1024xbf16, #tpu.memory_space<vmem>>, vector<64x256xbf16>
    %98 = arith.truncf %96 : vector<16x64xf32> to vector<16x64xbf16>
    %cst_48 = arith.constant dense<0.000000e+00> : vector<16x256xf32>
    %99 = tpu.matmul %98, %97, %cst_48 {dimension_numbers = #tpu.dot_dimension_numbers<[1], [0], [0], [1], [0, 0, 1, 1], [], []>} : vector<16x64xbf16>, vector<64x256xbf16>, vector<16x256xf32> -> vector<16x256xf32>
    %100 = arith.addf %78, %99 : vector<16x256xf32>
    %101 = vector.extract_strided_slice %27 {offsets = [0, 192], sizes = [16, 64], strides = [1, 1]} : vector<32x256xbf16> to vector<16x64xbf16>
    %102 = vector.extract_strided_slice %28 {offsets = [0, 192], sizes = [16, 64], strides = [1, 1]} : vector<32x256xbf16> to vector<16x64xbf16>
    %103 = vector.extract_strided_slice %29 {offsets = [0, 192], sizes = [16, 64], strides = [1, 1]} : vector<32x256xbf16> to vector<16x64xbf16>
    %cst_49 = arith.constant dense<0.000000e+00> : vector<16x16xf32>
    %104 = tpu.matmul %101, %102, %cst_49 {dimension_numbers = #tpu.dot_dimension_numbers<[1], [1], [0], [0], [0, 0, 1, 0], [], []>} : vector<16x64xbf16>, vector<16x64xbf16>, vector<16x16xf32> -> vector<16x16xf32>
    %105 = arith.addf %104, %31 : vector<16x16xf32>
    %cst_50 = arith.constant dense<0xFF800000> : vector<16xf32>
    %106 = vector.multi_reduction <maximumf>, %105, %cst_50 [1] : vector<16x16xf32> to vector<16xf32>
    %107 = vector.shape_cast %106 : vector<16xf32> to vector<16x1xf32>
    %108 = vector.broadcast %107 : vector<16x1xf32> to vector<16x16xf32>
    %109 = arith.subf %105, %108 : vector<16x16xf32>
    %110 = math.exp %109 : vector<16x16xf32>
    %cst_51 = arith.constant dense<0.000000e+00> : vector<16xf32>
    %111 = vector.multi_reduction <add>, %110, %cst_51 [1] : vector<16x16xf32> to vector<16xf32>
    %112 = vector.shape_cast %111 : vector<16xf32> to vector<16x1xf32>
    %113 = tpu.reciprocal %112 {approx = true} : vector<16x1xf32> -> vector<16x1xf32>
    %114 = vector.broadcast %113 : vector<16x1xf32> to vector<16x16xf32>
    %115 = arith.mulf %110, %114 : vector<16x16xf32>
    %116 = arith.mulf %115, %33 : vector<16x16xf32>
    %117 = arith.truncf %116 : vector<16x16xf32> to vector<16x16xbf16>
    %cst_52 = arith.constant dense<0.000000e+00> : vector<16x64xf32>
    %118 = tpu.matmul %117, %103, %cst_52 {dimension_numbers = #tpu.dot_dimension_numbers<[1], [0], [0], [1], [0, 0, 1, 1], [], []>} : vector<16x16xbf16>, vector<16x64xbf16>, vector<16x64xf32> -> vector<16x64xf32>
    %c192 = arith.constant 192 : index
    %c768_53 = arith.constant 768 : index
    %119 = vector.load %arg5[%c192, %c768_53] : memref<256x1024xbf16, #tpu.memory_space<vmem>>, vector<64x256xbf16>
    %120 = arith.truncf %118 : vector<16x64xf32> to vector<16x64xbf16>
    %cst_54 = arith.constant dense<0.000000e+00> : vector<16x256xf32>
    %121 = tpu.matmul %120, %119, %cst_54 {dimension_numbers = #tpu.dot_dimension_numbers<[1], [0], [0], [1], [0, 0, 1, 1], [], []>} : vector<16x64xbf16>, vector<64x256xbf16>, vector<16x256xf32> -> vector<16x256xf32>
    %122 = arith.addf %100, %121 : vector<16x256xf32>
    %c0_55 = arith.constant 0 : index
    %c1_56 = arith.constant 1 : index
    %c0_57 = arith.constant 0 : index
    %c0_58 = arith.constant 0 : index
    %123 = vector.load %arg4[%c0_55, %c1_56, %c0_57, %c0_58] : memref<2x2x16x16xf32, #tpu.memory_space<vmem>>, vector<1x1x16x16xf32>
    %124 = vector.shape_cast %123 : vector<1x1x16x16xf32> to vector<16x16xf32>
    %c1_59 = arith.constant 1 : index
    %c1_60 = arith.constant 1 : index
    %c0_61 = arith.constant 0 : index
    %c0_62 = arith.constant 0 : index
    %125 = vector.load %arg4[%c1_59, %c1_60, %c0_61, %c0_62] : memref<2x2x16x16xf32, #tpu.memory_space<vmem>>, vector<1x1x16x16xf32>
    %126 = vector.shape_cast %125 : vector<1x1x16x16xf32> to vector<16x16xf32>
    %cst_63 = arith.constant 0.000000e+00 : f32
    %127 = vector.broadcast %cst_63 : f32 to vector<16x256xf32>
    %128 = vector.extract_strided_slice %27 {offsets = [16, 0], sizes = [16, 64], strides = [1, 1]} : vector<32x256xbf16> to vector<16x64xbf16>
    %129 = vector.extract_strided_slice %28 {offsets = [16, 0], sizes = [16, 64], strides = [1, 1]} : vector<32x256xbf16> to vector<16x64xbf16>
    %130 = vector.extract_strided_slice %29 {offsets = [16, 0], sizes = [16, 64], strides = [1, 1]} : vector<32x256xbf16> to vector<16x64xbf16>
    %cst_64 = arith.constant dense<0.000000e+00> : vector<16x16xf32>
    %131 = tpu.matmul %128, %129, %cst_64 {dimension_numbers = #tpu.dot_dimension_numbers<[1], [1], [0], [0], [0, 0, 1, 0], [], []>} : vector<16x64xbf16>, vector<16x64xbf16>, vector<16x16xf32> -> vector<16x16xf32>
    %132 = arith.addf %131, %124 : vector<16x16xf32>
    %cst_65 = arith.constant dense<0xFF800000> : vector<16xf32>
    %133 = vector.multi_reduction <maximumf>, %132, %cst_65 [1] : vector<16x16xf32> to vector<16xf32>
    %134 = vector.shape_cast %133 : vector<16xf32> to vector<16x1xf32>
    %135 = vector.broadcast %134 : vector<16x1xf32> to vector<16x16xf32>
    %136 = arith.subf %132, %135 : vector<16x16xf32>
    %137 = math.exp %136 : vector<16x16xf32>
    %cst_66 = arith.constant dense<0.000000e+00> : vector<16xf32>
    %138 = vector.multi_reduction <add>, %137, %cst_66 [1] : vector<16x16xf32> to vector<16xf32>
    %139 = vector.shape_cast %138 : vector<16xf32> to vector<16x1xf32>
    %140 = tpu.reciprocal %139 {approx = true} : vector<16x1xf32> -> vector<16x1xf32>
    %141 = vector.broadcast %140 : vector<16x1xf32> to vector<16x16xf32>
    %142 = arith.mulf %137, %141 : vector<16x16xf32>
    %143 = arith.mulf %142, %126 : vector<16x16xf32>
    %144 = arith.truncf %143 : vector<16x16xf32> to vector<16x16xbf16>
    %cst_67 = arith.constant dense<0.000000e+00> : vector<16x64xf32>
    %145 = tpu.matmul %144, %130, %cst_67 {dimension_numbers = #tpu.dot_dimension_numbers<[1], [0], [0], [1], [0, 0, 1, 1], [], []>} : vector<16x16xbf16>, vector<16x64xbf16>, vector<16x64xf32> -> vector<16x64xf32>
    %c0_68 = arith.constant 0 : index
    %c768_69 = arith.constant 768 : index
    %146 = vector.load %arg5[%c0_68, %c768_69] : memref<256x1024xbf16, #tpu.memory_space<vmem>>, vector<64x256xbf16>
    %147 = arith.truncf %145 : vector<16x64xf32> to vector<16x64xbf16>
    %cst_70 = arith.constant dense<0.000000e+00> : vector<16x256xf32>
    %148 = tpu.matmul %147, %146, %cst_70 {dimension_numbers = #tpu.dot_dimension_numbers<[1], [0], [0], [1], [0, 0, 1, 1], [], []>} : vector<16x64xbf16>, vector<64x256xbf16>, vector<16x256xf32> -> vector<16x256xf32>
    %149 = arith.addf %127, %148 : vector<16x256xf32>
    %150 = vector.extract_strided_slice %27 {offsets = [16, 64], sizes = [16, 64], strides = [1, 1]} : vector<32x256xbf16> to vector<16x64xbf16>
    %151 = vector.extract_strided_slice %28 {offsets = [16, 64], sizes = [16, 64], strides = [1, 1]} : vector<32x256xbf16> to vector<16x64xbf16>
    %152 = vector.extract_strided_slice %29 {offsets = [16, 64], sizes = [16, 64], strides = [1, 1]} : vector<32x256xbf16> to vector<16x64xbf16>
    %cst_71 = arith.constant dense<0.000000e+00> : vector<16x16xf32>
    %153 = tpu.matmul %150, %151, %cst_71 {dimension_numbers = #tpu.dot_dimension_numbers<[1], [1], [0], [0], [0, 0, 1, 0], [], []>} : vector<16x64xbf16>, vector<16x64xbf16>, vector<16x16xf32> -> vector<16x16xf32>
    %154 = arith.addf %153, %124 : vector<16x16xf32>
    %cst_72 = arith.constant dense<0xFF800000> : vector<16xf32>
    %155 = vector.multi_reduction <maximumf>, %154, %cst_72 [1] : vector<16x16xf32> to vector<16xf32>
    %156 = vector.shape_cast %155 : vector<16xf32> to vector<16x1xf32>
    %157 = vector.broadcast %156 : vector<16x1xf32> to vector<16x16xf32>
    %158 = arith.subf %154, %157 : vector<16x16xf32>
    %159 = math.exp %158 : vector<16x16xf32>
    %cst_73 = arith.constant dense<0.000000e+00> : vector<16xf32>
    %160 = vector.multi_reduction <add>, %159, %cst_73 [1] : vector<16x16xf32> to vector<16xf32>
    %161 = vector.shape_cast %160 : vector<16xf32> to vector<16x1xf32>
    %162 = tpu.reciprocal %161 {approx = true} : vector<16x1xf32> -> vector<16x1xf32>
    %163 = vector.broadcast %162 : vector<16x1xf32> to vector<16x16xf32>
    %164 = arith.mulf %159, %163 : vector<16x16xf32>
    %165 = arith.mulf %164, %126 : vector<16x16xf32>
    %166 = arith.truncf %165 : vector<16x16xf32> to vector<16x16xbf16>
    %cst_74 = arith.constant dense<0.000000e+00> : vector<16x64xf32>
    %167 = tpu.matmul %166, %152, %cst_74 {dimension_numbers = #tpu.dot_dimension_numbers<[1], [0], [0], [1], [0, 0, 1, 1], [], []>} : vector<16x16xbf16>, vector<16x64xbf16>, vector<16x64xf32> -> vector<16x64xf32>
    %c64_75 = arith.constant 64 : index
    %c768_76 = arith.constant 768 : index
    %168 = vector.load %arg5[%c64_75, %c768_76] : memref<256x1024xbf16, #tpu.memory_space<vmem>>, vector<64x256xbf16>
    %169 = arith.truncf %167 : vector<16x64xf32> to vector<16x64xbf16>
    %cst_77 = arith.constant dense<0.000000e+00> : vector<16x256xf32>
    %170 = tpu.matmul %169, %168, %cst_77 {dimension_numbers = #tpu.dot_dimension_numbers<[1], [0], [0], [1], [0, 0, 1, 1], [], []>} : vector<16x64xbf16>, vector<64x256xbf16>, vector<16x256xf32> -> vector<16x256xf32>
    %171 = arith.addf %149, %170 : vector<16x256xf32>
    %172 = vector.extract_strided_slice %27 {offsets = [16, 128], sizes = [16, 64], strides = [1, 1]} : vector<32x256xbf16> to vector<16x64xbf16>
    %173 = vector.extract_strided_slice %28 {offsets = [16, 128], sizes = [16, 64], strides = [1, 1]} : vector<32x256xbf16> to vector<16x64xbf16>
    %174 = vector.extract_strided_slice %29 {offsets = [16, 128], sizes = [16, 64], strides = [1, 1]} : vector<32x256xbf16> to vector<16x64xbf16>
    %cst_78 = arith.constant dense<0.000000e+00> : vector<16x16xf32>
    %175 = tpu.matmul %172, %173, %cst_78 {dimension_numbers = #tpu.dot_dimension_numbers<[1], [1], [0], [0], [0, 0, 1, 0], [], []>} : vector<16x64xbf16>, vector<16x64xbf16>, vector<16x16xf32> -> vector<16x16xf32>
    %176 = arith.addf %175, %124 : vector<16x16xf32>
    %cst_79 = arith.constant dense<0xFF800000> : vector<16xf32>
    %177 = vector.multi_reduction <maximumf>, %176, %cst_79 [1] : vector<16x16xf32> to vector<16xf32>
    %178 = vector.shape_cast %177 : vector<16xf32> to vector<16x1xf32>
    %179 = vector.broadcast %178 : vector<16x1xf32> to vector<16x16xf32>
    %180 = arith.subf %176, %179 : vector<16x16xf32>
    %181 = math.exp %180 : vector<16x16xf32>
    %cst_80 = arith.constant dense<0.000000e+00> : vector<16xf32>
    %182 = vector.multi_reduction <add>, %181, %cst_80 [1] : vector<16x16xf32> to vector<16xf32>
    %183 = vector.shape_cast %182 : vector<16xf32> to vector<16x1xf32>
    %184 = tpu.reciprocal %183 {approx = true} : vector<16x1xf32> -> vector<16x1xf32>
    %185 = vector.broadcast %184 : vector<16x1xf32> to vector<16x16xf32>
    %186 = arith.mulf %181, %185 : vector<16x16xf32>
    %187 = arith.mulf %186, %126 : vector<16x16xf32>
    %188 = arith.truncf %187 : vector<16x16xf32> to vector<16x16xbf16>
    %cst_81 = arith.constant dense<0.000000e+00> : vector<16x64xf32>
    %189 = tpu.matmul %188, %174, %cst_81 {dimension_numbers = #tpu.dot_dimension_numbers<[1], [0], [0], [1], [0, 0, 1, 1], [], []>} : vector<16x16xbf16>, vector<16x64xbf16>, vector<16x64xf32> -> vector<16x64xf32>
    %c128_82 = arith.constant 128 : index
    %c768_83 = arith.constant 768 : index
    %190 = vector.load %arg5[%c128_82, %c768_83] : memref<256x1024xbf16, #tpu.memory_space<vmem>>, vector<64x256xbf16>
    %191 = arith.truncf %189 : vector<16x64xf32> to vector<16x64xbf16>
    %cst_84 = arith.constant dense<0.000000e+00> : vector<16x256xf32>
    %192 = tpu.matmul %191, %190, %cst_84 {dimension_numbers = #tpu.dot_dimension_numbers<[1], [0], [0], [1], [0, 0, 1, 1], [], []>} : vector<16x64xbf16>, vector<64x256xbf16>, vector<16x256xf32> -> vector<16x256xf32>
    %193 = arith.addf %171, %192 : vector<16x256xf32>
    %194 = vector.extract_strided_slice %27 {offsets = [16, 192], sizes = [16, 64], strides = [1, 1]} : vector<32x256xbf16> to vector<16x64xbf16>
    %195 = vector.extract_strided_slice %28 {offsets = [16, 192], sizes = [16, 64], strides = [1, 1]} : vector<32x256xbf16> to vector<16x64xbf16>
    %196 = vector.extract_strided_slice %29 {offsets = [16, 192], sizes = [16, 64], strides = [1, 1]} : vector<32x256xbf16> to vector<16x64xbf16>
    %cst_85 = arith.constant dense<0.000000e+00> : vector<16x16xf32>
    %197 = tpu.matmul %194, %195, %cst_85 {dimension_numbers = #tpu.dot_dimension_numbers<[1], [1], [0], [0], [0, 0, 1, 0], [], []>} : vector<16x64xbf16>, vector<16x64xbf16>, vector<16x16xf32> -> vector<16x16xf32>
    %198 = arith.addf %197, %124 : vector<16x16xf32>
    %cst_86 = arith.constant dense<0xFF800000> : vector<16xf32>
    %199 = vector.multi_reduction <maximumf>, %198, %cst_86 [1] : vector<16x16xf32> to vector<16xf32>
    %200 = vector.shape_cast %199 : vector<16xf32> to vector<16x1xf32>
    %201 = vector.broadcast %200 : vector<16x1xf32> to vector<16x16xf32>
    %202 = arith.subf %198, %201 : vector<16x16xf32>
    %203 = math.exp %202 : vector<16x16xf32>
    %cst_87 = arith.constant dense<0.000000e+00> : vector<16xf32>
    %204 = vector.multi_reduction <add>, %203, %cst_87 [1] : vector<16x16xf32> to vector<16xf32>
    %205 = vector.shape_cast %204 : vector<16xf32> to vector<16x1xf32>
    %206 = tpu.reciprocal %205 {approx = true} : vector<16x1xf32> -> vector<16x1xf32>
    %207 = vector.broadcast %206 : vector<16x1xf32> to vector<16x16xf32>
    %208 = arith.mulf %203, %207 : vector<16x16xf32>
    %209 = arith.mulf %208, %126 : vector<16x16xf32>
    %210 = arith.truncf %209 : vector<16x16xf32> to vector<16x16xbf16>
    %cst_88 = arith.constant dense<0.000000e+00> : vector<16x64xf32>
    %211 = tpu.matmul %210, %196, %cst_88 {dimension_numbers = #tpu.dot_dimension_numbers<[1], [0], [0], [1], [0, 0, 1, 1], [], []>} : vector<16x16xbf16>, vector<16x64xbf16>, vector<16x64xf32> -> vector<16x64xf32>
    %c192_89 = arith.constant 192 : index
    %c768_90 = arith.constant 768 : index
    %212 = vector.load %arg5[%c192_89, %c768_90] : memref<256x1024xbf16, #tpu.memory_space<vmem>>, vector<64x256xbf16>
    %213 = arith.truncf %211 : vector<16x64xf32> to vector<16x64xbf16>
    %cst_91 = arith.constant dense<0.000000e+00> : vector<16x256xf32>
    %214 = tpu.matmul %213, %212, %cst_91 {dimension_numbers = #tpu.dot_dimension_numbers<[1], [0], [0], [1], [0, 0, 1, 1], [], []>} : vector<16x64xbf16>, vector<64x256xbf16>, vector<16x256xf32> -> vector<16x256xf32>
    %215 = arith.addf %193, %214 : vector<16x256xf32>
    %216 = tpu.concatenate %122, %215 in 0 : vector<16x256xf32>, vector<16x256xf32> -> vector<32x256xf32>
    %217 = arith.addf %1, %216 : vector<32x256xf32>
    %218 = vector.broadcast %10 : vector<1x256xf32> to vector<32x256xf32>
    %219 = arith.addf %217, %218 : vector<32x256xf32>
    %cst_92 = arith.constant dense<0.000000e+00> : vector<32xf32>
    %220 = vector.multi_reduction <add>, %219, %cst_92 [1] : vector<32x256xf32> to vector<32xf32>
    %221 = vector.shape_cast %220 : vector<32xf32> to vector<32x1xf32>
    %cst_93 = arith.constant 2.560000e+02 : f32
    %222 = vector.broadcast %cst_93 : f32 to vector<32x1xf32>
    %223 = arith.divf %221, %222 : vector<32x1xf32>
    %224 = vector.broadcast %223 : vector<32x1xf32> to vector<32x256xf32>
    %225 = arith.subf %219, %224 : vector<32x256xf32>
    %226 = arith.mulf %225, %225 : vector<32x256xf32>
    %cst_94 = arith.constant dense<0.000000e+00> : vector<32xf32>
    %227 = vector.multi_reduction <add>, %226, %cst_94 [1] : vector<32x256xf32> to vector<32xf32>
    %228 = vector.shape_cast %227 : vector<32xf32> to vector<32x1xf32>
    %cst_95 = arith.constant 2.560000e+02 : f32
    %229 = vector.broadcast %cst_95 : f32 to vector<32x1xf32>
    %230 = arith.divf %228, %229 : vector<32x1xf32>
    %cst_96 = arith.constant 9.99999974E-6 : f32
    %231 = vector.broadcast %cst_96 : f32 to vector<32x1xf32>
    %232 = arith.addf %230, %231 : vector<32x1xf32>
    %233 = math.rsqrt %232 : vector<32x1xf32>
    %234 = vector.broadcast %233 : vector<32x1xf32> to vector<32x256xf32>
    %235 = arith.mulf %225, %234 : vector<32x256xf32>
    %236 = vector.broadcast %11 : vector<1x256xf32> to vector<32x256xf32>
    %237 = arith.mulf %235, %236 : vector<32x256xf32>
    %238 = vector.broadcast %12 : vector<1x256xf32> to vector<32x256xf32>
    %239 = arith.addf %237, %238 : vector<32x256xf32>
    %240 = vector.shape_cast %239 : vector<32x256xf32> to vector<2x16x256xf32>
    %c0_97 = arith.constant 0 : index
    %c0_98 = arith.constant 0 : index
    %c0_99 = arith.constant 0 : index
    %241 = vector.load %arg7[%c0_97, %c0_98, %c0_99] : memref<2x16x256xf32, #tpu.memory_space<vmem>>, vector<2x16x256xf32>
    tpu.vector_store %arg7[%c0_97, %c0_98, %c0_99], %240 {strides = array<i32>} : memref<2x16x256xf32, #tpu.memory_space<vmem>>, vector<2x16x256xf32>,
    return
  }
  func.func @transform_0(%arg0: i32) -> (i32, i32, i32) {
    %c0_i32 = arith.constant 0 : i32
    %c0_i32_0 = arith.constant 0 : i32
    %c0_i32_1 = arith.constant 0 : i32
    return %arg0, %c0_i32, %c0_i32_0 : i32, i32, i32
  }
  func.func @transform_1(%arg0: i32) -> (i32, i32, i32) {
    %c0_i32 = arith.constant 0 : i32
    %c0_i32_0 = arith.constant 0 : i32
    %c0_i32_1 = arith.constant 0 : i32
    return %arg0, %c0_i32, %c0_i32_0 : i32, i32, i32
  }
  func.func @transform_2(%arg0: i32) -> (i32, i32, i32) {
    %c0_i32 = arith.constant 0 : i32
    %c0_i32_0 = arith.constant 0 : i32
    %c0_i32_1 = arith.constant 0 : i32
    return %arg0, %c0_i32, %c0_i32_0 : i32, i32, i32
  }
  func.func @transform_3(%arg0: i32) -> (i32, i32, i32, i32) {
    %c0_i32 = arith.constant 0 : i32
    %c0_i32_0 = arith.constant 0 : i32
    %c0_i32_1 = arith.constant 0 : i32
    %c0_i32_2 = arith.constant 0 : i32
    return %c0_i32, %arg0, %c0_i32_0, %c0_i32_1 : i32, i32, i32, i32
  }
  func.func @transform_4(%arg0: i32) -> (i32, i32) {
    %c0_i32 = arith.constant 0 : i32
    %c0_i32_0 = arith.constant 0 : i32
    %c0_i32_1 = arith.constant 0 : i32
    return %c0_i32, %c0_i32_0 : i32, i32
  }
  func.func @transform_5(%arg0: i32) -> (i32, i32) {
    %c0_i32 = arith.constant 0 : i32
    %c0_i32_0 = arith.constant 0 : i32
    %c0_i32_1 = arith.constant 0 : i32
    return %c0_i32, %c0_i32_0 : i32, i32
  }
  func.func @transform_6(%arg0: i32) -> (i32, i32, i32) {
    %c0_i32 = arith.constant 0 : i32
    %c0_i32_0 = arith.constant 0 : i32
    %c0_i32_1 = arith.constant 0 : i32
    return %arg0, %c0_i32, %c0_i32_0 : i32, i32, i32
  }
}

</mosaic_0001>

<bundles_post_ra>
// kernel: tpu_custom_call.1
= control target key start
LH: loop header
LB: loop body
LE: loop exit
PB: predicated region body
PF: predicated region fallthrough
CT: control target
= control target key end

     0   :  { %11 = vsyncpa [#allocation3], 0  ;;  %s3858_s0 = inlined_call_operand.hbm [shape: f32[2,16,256], index: 0, kind: input, shape index: {}]   ;;  %s3859_s1 = inlined_call_operand.hbm [shape: bf16[2,16,256], index: 1, kind: input, shape index: {}]   ;;  %s3860_s2 = inlined_call_operand.hbm [shape: bf16[2,16,256], index: 2, kind: input, shape index: {}]   ;;  %s3861_s3 = inlined_call_operand.hbm [shape: f32[2,2,16,16], index: 3, kind: input, shape index: {}]   ;;  %s3862_s4 = inlined_call_operand.hbm [shape: bf16[256,1024], index: 4, kind: input, shape index: {}]   ;;  %s3863_s5 = inlined_call_operand.hbm [shape: f32[6,256], index: 5, kind: input, shape index: {}]   ;;  %s3864_s6 = inlined_call_operand.hbm [shape: f32[2,16,256], index: 6, kind: output, shape index: {}]  }
   0x1   :  { %12 = vsyncpa [#allocation6], 0 }
   0x2   :  { %13 = vsyncpa [#allocation9], 0 }
   0x3   :  { %14 = vsyncpa [#allocation12], 0 }
   0x4   :  { %15 = vsyncpa [#allocation4], 0  ;;  %s3234_s21 = smov [#allocation5]  }
   0x5   :  { %s33_s22 = sshll.u32 %s3234_s21, 4  ;;  %s34_s22 = int_to_ptr.vmem [resolvable:$true] %s33_s22 }
   0x6   :  { %s3092_s23 = scalar_lea.vmem %s34_s22, 512  ;;  %p3097_p1 = scmp.lt.s32.totalorder %s34_s22, %s34_s22 }
   0x7   :  { %p3093_p0 = scmp.ne.s32.totalorder %s34_s22, %s3092_s23  ;;  %p3098_p2 = scmp.lt.s32.totalorder %s3092_s23, %s3092_s23 }
   0x9   :  { %p3099_p3 = por %p3098_p2, %p3097_p1 }
   0xb   :  { %p3100_p4 = pnand %p3099_p3, %p3093_p0 }
   0xd   :  { %3103 = shalt.err (!%p3100_p4)
}
   0xe   :  { %s3235_s24 = smov 128   ;;  %s3236_s25 = smov 8  }
   0xf   :  { %39 = dma.hbm_to_vmem [thread:$0]  %s3859_s1, 512, %s34_s22, [#allocation6], %s3235_s24, %s3235_s24, %s3236_s25  }
  0x10   :  { %s3237_s28 = smov [#allocation8]   ;;  %s3238_s30 = smov [#allocation2]  }
  0x11   :  { %s57_s29 = sshll.u32 %s3237_s28, 4  ;;  %s21_s7 = sshll.u32 %s3238_s30, 4  ;;  %s58_s29 = int_to_ptr.vmem [resolvable:$true] %s57_s29  ;;  %s22_s7 = int_to_ptr.vmem [resolvable:$true] %s21_s7 }
  0x12   :  { %s3112_s8 = scalar_lea.vmem %s58_s29, 1024  ;;  %p3117_p6 = scmp.lt.s32.totalorder %s58_s29, %s58_s29 }
  0x13   :  { %p3113_p5 = scmp.ne.s32.totalorder %s58_s29, %s3112_s8  ;;  %p3118_p7 = scmp.lt.s32.totalorder %s3112_s8, %s3112_s8 }
  0x15   :  { %p3119_p8 = por %p3118_p7, %p3117_p6 }
  0x17   :  { %p3120_p9 = pnand %p3119_p8, %p3113_p5 }
  0x19   :  { %3123 = shalt.err (!%p3120_p9)
}
  0x1a   :  { %63 = dma.hbm_to_vmem [thread:$0]  %s3861_s3, 1024, %s58_s29, [#allocation9], %s3235_s24, %s3235_s24, %s3236_s25  }
  0x1b   :  { %s3132_s1 = scalar_lea.vmem %s22_s7, 1024  ;;  %p3137_p11 = scmp.lt.s32.totalorder %s22_s7, %s22_s7 }
  0x1c   :  { %p3133_p10 = scmp.ne.s32.totalorder %s22_s7, %s3132_s1  ;;  %p3138_p12 = scmp.lt.s32.totalorder %s3132_s1, %s3132_s1 }
  0x1e   :  { %p3139_p13 = por %p3138_p12, %p3137_p11 }
  0x20   :  { %p3140_p0 = pnand %p3139_p13, %p3133_p10 }
  0x22   :  { %3143 = shalt.err (!%p3140_p0)
}
  0x23   :  { %s3239_s11 = smov 256   ;;  %s3240_s12 = smov 16  }
  0x24   :  { %27 = dma.hbm_to_vmem [thread:$0]  %s3858_s0, 1024, %s22_s7, [#allocation3], %s3239_s11, %s3239_s11, %s3240_s12  }
  0x25   :  { %s3241_s15 = smov [#allocation7]   ;;  %s3242_s3 = smov [#allocation10]  }
  0x26   :  { %s45_s16 = sshll.u32 %s3241_s15, 4  ;;  %s69_s17 = sshll.u32 %s3242_s3, 4  ;;  %s46_s16 = int_to_ptr.vmem [resolvable:$true] %s45_s16  ;;  %s70_s17 = int_to_ptr.vmem [resolvable:$true] %s69_s17 }
  0x27   :  { %s3152_s18 = scalar_lea.vmem %s46_s16, 512  ;;  %p3157_p2 = scmp.lt.s32.totalorder %s46_s16, %s46_s16 }
  0x28   :  { %p3153_p1 = scmp.ne.s32.totalorder %s46_s16, %s3152_s18  ;;  %p3158_p3 = scmp.lt.s32.totalorder %s3152_s18, %s3152_s18 }
  0x2a   :  { %p3159_p4 = por %p3158_p3, %p3157_p2 }
  0x2c   :  { %p3160_p5 = pnand %p3159_p4, %p3153_p1 }
  0x2e   :  { %3163 = shalt.err (!%p3160_p5)
}
  0x2f   :  { %51 = dma.hbm_to_vmem [thread:$0]  %s3860_s2, 512, %s46_s16, [#allocation6], %s3235_s24, %s3235_s24, %s3236_s25  }
  0x30   :  { %s3172_s0 = scalar_lea.vmem %s70_s17, 16384  ;;  %p3177_p7 = scmp.lt.s32.totalorder %s70_s17, %s70_s17 }
  0x31   :  { %p3173_p6 = scmp.ne.s32.totalorder %s70_s17, %s3172_s0  ;;  %p3178_p8 = scmp.lt.s32.totalorder %s3172_s0, %s3172_s0 }
  0x33   :  { %p3179_p9 = por %p3178_p8, %p3177_p7 }
  0x35   :  { %p3180_p10 = pnand %p3179_p9, %p3173_p6 }
  0x37   :  { %3183 = shalt.err (!%p3180_p10)
}
  0x38   :  { %s3243_s21 = smov 512   ;;  %s3244_s22 = smov 32  }
  0x39   :  { %75 = dma.hbm_to_vmem [thread:$0]  %s3862_s4, 16384, %s70_s17, [#allocation9], %s3243_s21, %s3243_s21, %s3244_s22  }
  0x3a   :  { %s3245_s27 = smov [#allocation11]  }
  0x3b   :  { %s82_s28 = sshll.u32 %s3245_s27, 4  ;;  %s83_s28 = int_to_ptr.vmem [resolvable:$true] %s82_s28 }
  0x3c   :  { %s3192_s29 = scalar_lea.vmem %s83_s28, 256  ;;  %p3197_p12 = scmp.lt.s32.totalorder %s83_s28, %s83_s28 }
  0x3d   :  { %p3193_p11 = scmp.ne.s32.totalorder %s83_s28, %s3192_s29  ;;  %p3198_p13 = scmp.lt.s32.totalorder %s3192_s29, %s3192_s29 }
  0x3f   :  { %p3199_p0 = por %p3198_p13, %p3197_p12 }
  0x41   :  { %p3200_p1 = pnand %p3199_p0, %p3193_p11 }
  0x43   :  { %3203 = shalt.err (!%p3200_p1)
}
  0x44   :  { %85 = dma.hbm_to_vmem [thread:$0]  %s3863_s5, 256, %s83_s28, [#allocation12]  }
  0x45   :  { %3224 = dma.done.wait [#allocation3], 1024  }
  0x46   :  { %3225 = vsyncadd [#allocation3], 4294966272 }
  0x47   :  { %3226 = dma.done.wait [#allocation6], 1024  }
  0x48   :  { %3227 = vsyncadd [#allocation6], 4294966272 }
  0x49   :  { %3228 = dma.done.wait [#allocation9], 17408  }
  0x4a   :  { %3229 = vsyncadd [#allocation9], 4294949888 }
  0x4b   :  { %3230 = dma.done.wait [#allocation12], 256  }
  0x4c   :  { %3231 = vsyncadd [#allocation12], 4294967040  ;;  %v406_v0 = vld [vmem:[#allocation10 + $0x1c8] sm:$0xff]  ;;  %v150_v6 = vld [vmem:[#allocation10 + $0x1c0] sm:$0xff]  ;;  %vm3247_vm0 = vmmov 0   ;;  %vm969_vm1 = vcmask 523264  }
  0x4d   :  { %v407_v1 = vld [vmem:[#allocation10 + $0x1e8] sm:$0xff]  ;;  %v151_v7 = vld [vmem:[#allocation10 + $0x1e0] sm:$0xff]  ;;  %v108_v60 = vld [vmem:[#allocation2 + $0x18] sm:$0xff]  ;;  %vm1017_vm2 = vcmask 130048   ;;  %s3248_s4 = smov 64   ;;  %s3250_s5 = smov [#allocation13]  }
  0x4e   :  { %v404_v2 = vld [vmem:[#allocation10 + $0x188] sm:$0xff]  ;;  %v2738_v3 = vcombine.high %v406_v0, %v407_v1  ;;  %v2737_v4 = vcombine.low %v406_v0, %v407_v1  ;;  %v2702_v9 = vcombine.high %v150_v6, %v151_v7  ;;  %v2701_v10 = vcombine.low %v150_v6, %v151_v7  ;;  %v148_v13 = vld [vmem:[#allocation10 + $0x180] sm:$0xff]  ;;  %s2672_s25 = sshll.u32 %s3250_s5, 4  ;;  %s2673_s25 = int_to_ptr.vmem [resolvable:$true] %s2672_s25 }
  0x4f   :  { %v405_v5 = vld [vmem:[#allocation10 + $0x1a8] sm:$0xff]  ;;  %v149_v14 = vld [vmem:[#allocation10 + $0x1a0] sm:$0xff]  ;;  %s3204_s30 = scalar_lea.vmem %s2673_s25, 1024  ;;  %p3209_p3 = scmp.lt.s32.totalorder %s2673_s25, %s2673_s25 }
  0x50   :  { %v2736_v8 = vcombine.high %v404_v2, %v405_v5  ;;  %v402_v11 = vld [vmem:[#allocation10 + $0x148] sm:$0xff]  ;;  %615 = vmatprep.subr.bf16.mxu1 %v2738_v3  ;;  %v2735_v15 = vcombine.low %v404_v2, %v405_v5  ;;  %339 = vmatprep.subr.bf16.mxu0 %v2702_v9  ;;  %v2700_v16 = vcombine.high %v148_v13, %v149_v14  ;;  %v146_v17 = vld [vmem:[#allocation10 + $0x140] sm:$0xff]  ;;  %p3205_p2 = scmp.ne.s32.totalorder %s2673_s25, %s3204_s30  ;;  %p3210_p4 = scmp.lt.s32.totalorder %s3204_s30, %s3204_s30 }
  0x51   :  { %v403_v12 = vld [vmem:[#allocation10 + $0x168] sm:$0xff]  ;;  %616 = vmatpush1.bf16.msra.mxu1 %v2737_v4  ;;  %v147_v18 = vld [vmem:[#allocation10 + $0x160] sm:$0xff]  ;;  %340 = vmatpush1.bf16.msra.mxu0 %v2701_v10  ;;  %v2699_v20 = vcombine.low %v148_v13, %v149_v14 }
  0x52   :  { %617 = vmatprep.subr.bf16.mxu1 %v2736_v8  ;;  %v2734_v19 = vcombine.high %v402_v11, %v403_v12  ;;  %341 = vmatprep.subr.bf16.mxu0 %v2700_v16  ;;  %v400_v21 = vld [vmem:[#allocation10 + $0x108] sm:$0xff]  ;;  %v2698_v23 = vcombine.high %v146_v17, %v147_v18  ;;  %v144_v24 = vld [vmem:[#allocation10 + $0x100] sm:$0xff]  ;;  %v2733_v26 = vcombine.low %v402_v11, %v403_v12  ;;  %p3211_p5 = por %p3210_p4, %p3209_p3 }
  0x53   :  { %v401_v22 = vld [vmem:[#allocation10 + $0x128] sm:$0xff]  ;;  %v145_v25 = vld [vmem:[#allocation10 + $0x120] sm:$0xff]  ;;  %v2697_v28 = vcombine.low %v146_v17, %v147_v18 }
  0x54   :  { %v2732_v27 = vcombine.high %v400_v21, %v401_v22  ;;  %v398_v29 = vld [vmem:[#allocation10 + $0xc8] sm:$0xff]  ;;  %v2696_v31 = vcombine.high %v144_v24, %v145_v25  ;;  %v142_v32 = vld [vmem:[#allocation10 + $0xc0] sm:$0xff]  ;;  %v2731_v34 = vcombine.low %v400_v21, %v401_v22  ;;  %v2695_v36 = vcombine.low %v144_v24, %v145_v25  ;;  %p3212_p6 = pnand %p3211_p5, %p3205_p2 }
  0x55   :  { %618 = vmatpush1.bf16.msra.mxu1 %v2735_v15  ;;  %342 = vmatpush1.bf16.msra.mxu0 %v2699_v20  ;;  %v399_v30 = vld [vmem:[#allocation10 + $0xe8] sm:$0xff]  ;;  %v143_v33 = vld [vmem:[#allocation10 + $0xe0] sm:$0xff] }
  0x56   :  { %619 = vmatprep.subr.bf16.mxu1 %v2734_v19  ;;  %343 = vmatprep.subr.bf16.mxu0 %v2698_v23  ;;  %v2730_v35 = vcombine.high %v398_v29, %v399_v30  ;;  %v396_v37 = vld [vmem:[#allocation10 + $0x88] sm:$0xff]  ;;  %v2694_v39 = vcombine.high %v142_v32, %v143_v33  ;;  %v140_v40 = vld [vmem:[#allocation10 + $0x80] sm:$0xff]  ;;  %v2729_v42 = vcombine.low %v398_v29, %v399_v30 }
  0x57   :  { %v397_v38 = vld [vmem:[#allocation10 + $0xa8] sm:$0xff]  ;;  %v141_v41 = vld [vmem:[#allocation10 + $0xa0] sm:$0xff]  ;;  %v2693_v44 = vcombine.low %v142_v32, %v143_v33 }
  0x58   :  { %v2728_v43 = vcombine.high %v396_v37, %v397_v38  ;;  %v394_v45 = vld [vmem:[#allocation10 + $0x48] sm:$0xff]  ;;  %v2692_v47 = vcombine.high %v140_v40, %v141_v41  ;;  %v138_v48 = vld [vmem:[#allocation10 + $0x40] sm:$0xff]  ;;  %v2727_v50 = vcombine.low %v396_v37, %v397_v38  ;;  %v2691_v52 = vcombine.low %v140_v40, %v141_v41 }
  0x59   :  { %620 = vmatpush1.bf16.msra.mxu1 %v2733_v26  ;;  %344 = vmatpush1.bf16.msra.mxu0 %v2697_v28  ;;  %v395_v46 = vld [vmem:[#allocation10 + $0x68] sm:$0xff]  ;;  %v139_v49 = vld [vmem:[#allocation10 + $0x60] sm:$0xff] }
  0x5a   :  { %621 = vmatprep.subr.bf16.mxu1 %v2732_v27  ;;  %345 = vmatprep.subr.bf16.mxu0 %v2696_v31  ;;  %v2726_v51 = vcombine.high %v394_v45, %v395_v46  ;;  %v2994_v53 = vld [vmem:[#allocation5 + $0x4] ss:$8 sps:$4 sm:$0xff]   ;;  %v2690_v56 = vcombine.high %v138_v48, %v139_v49  ;;  %v2725_v61 = vcombine.low %v394_v45, %v395_v46 }
  0x5b   :  { %v392_v54 = vld [vmem:[#allocation10 + $0x8] sm:$0xff]  ;;  %v136_v58 = vld [vmem:[#allocation10] sm:$0xff]  ;;  %647 = vmatprep.mubr.bf16.mxu1 %v2994_v53  ;;  %v2689_v0 = vcombine.low %v138_v48, %v139_v49 }
  0x5c   :  { %v393_v55 = vld [vmem:[#allocation10 + $0x28] sm:$0xff]  ;;  %v137_v59 = vld [vmem:[#allocation10 + $0x20] sm:$0xff] }
  0x5d   :  { %622 = vmatpush1.bf16.msra.mxu1 %v2731_v34  ;;  %346 = vmatpush1.bf16.msra.mxu0 %v2695_v36  ;;  %v106_v57 = vld [vmem:[#allocation2 + $0x8] sm:$0xff]  ;;  %v2724_v63 = vcombine.high %v392_v54, %v393_v55  ;;  %v2688_v3 = vcombine.high %v136_v58, %v137_v59  ;;  %v166_v4 = vld [vmem:[#allocation10 + $0x3c0] sm:$0xff]  ;;  %v2723_v6 = vcombine.low %v392_v54, %v393_v55 }
  0x5e   :  { %623 = vmatprep.subr.bf16.mxu1 %v2730_v35  ;;  %347 = vmatprep.subr.bf16.mxu0 %v2694_v39  ;;  %v114_v62 = vpack.c.bf16 %v108_v60, %v106_v57  ;;  %v422_v1 = vld [vmem:[#allocation10 + $0x3c8] sm:$0xff]  ;;  %v167_v5 = vld [vmem:[#allocation10 + $0x3e0] sm:$0xff]  ;;  %v2687_v8 = vcombine.low %v136_v58, %v137_v59 }
  0x5f   :  { %v423_v2 = vld [vmem:[#allocation10 + $0x3e8] sm:$0xff]  ;;  %v2718_v11 = vcombine.high %v166_v4, %v167_v5  ;;  %v164_v12 = vld [vmem:[#allocation10 + $0x380] sm:$0xff]  ;;  %v2717_v16 = vcombine.low %v166_v4, %v167_v5  ;;  %v107_v5 = vld [vmem:[#allocation2 + $0x10] sm:$0xff] }
  0x60   :  { %371 = vmatprep.mubr.bf16.mxu0 %v114_v62  ;;  %v2754_v7 = vcombine.high %v422_v1, %v423_v2  ;;  %v420_v9 = vld [vmem:[#allocation10 + $0x388] sm:$0xff]  ;;  %v165_v13 = vld [vmem:[#allocation10 + $0x3a0] sm:$0xff]  ;;  %v2753_v14 = vcombine.low %v422_v1, %v423_v2 }
  0x61   :  { %624 = vmatpush1.bf16.msra.mxu1 %v2729_v42  ;;  %348 = vmatpush1.bf16.msra.mxu0 %v2693_v44  ;;  %v421_v10 = vld [vmem:[#allocation10 + $0x3a8] sm:$0xff]  ;;  %v2716_v19 = vcombine.high %v164_v12, %v165_v13  ;;  %v162_v20 = vld [vmem:[#allocation10 + $0x340] sm:$0xff]  ;;  %v2715_v24 = vcombine.low %v164_v12, %v165_v13 }
  0x62   :  { %625 = vmatprep.subr.bf16.mxu1 %v2728_v43  ;;  %349 = vmatprep.subr.bf16.mxu0 %v2692_v47  ;;  %v2752_v15 = vcombine.high %v420_v9, %v421_v10  ;;  %v418_v17 = vld [vmem:[#allocation10 + $0x348] sm:$0xff]  ;;  %v163_v21 = vld [vmem:[#allocation10 + $0x360] sm:$0xff]  ;;  %v2751_v22 = vcombine.low %v420_v9, %v421_v10  ;;  %v2997_v9 = vld [vmem:[#allocation5 + $0x10] ss:$8 sps:$4 sm:$0xff]   ;;  %v3246_v10 = vmov 0.0  }
  0x63   :  { %v419_v18 = vld [vmem:[#allocation10 + $0x368] sm:$0xff]  ;;  %v2714_v27 = vcombine.high %v162_v20, %v163_v21  ;;  %v160_v28 = vld [vmem:[#allocation10 + $0x300] sm:$0xff]  ;;  %v2713_v32 = vcombine.low %v162_v20, %v163_v21 }
  0x64   :  { %v2750_v23 = vcombine.high %v418_v17, %v419_v18  ;;  %v416_v25 = vld [vmem:[#allocation10 + $0x308] sm:$0xff]  ;;  %v161_v29 = vld [vmem:[#allocation10 + $0x320] sm:$0xff]  ;;  %v2749_v30 = vcombine.low %v418_v17, %v419_v18 }
  0x65   :  { %626 = vmatpush1.bf16.msra.mxu1 %v2727_v50  ;;  %350 = vmatpush1.bf16.msra.mxu0 %v2691_v52  ;;  %v417_v26 = vld [vmem:[#allocation10 + $0x328] sm:$0xff]  ;;  %v2712_v35 = vcombine.high %v160_v28, %v161_v29  ;;  %v158_v36 = vld [vmem:[#allocation10 + $0x2c0] sm:$0xff]  ;;  %v2711_v40 = vcombine.low %v160_v28, %v161_v29 }
  0x66   :  { %627 = vmatprep.subr.bf16.mxu1 %v2726_v51  ;;  %351 = vmatprep.subr.bf16.mxu0 %v2690_v56  ;;  %v2748_v31 = vcombine.high %v416_v25, %v417_v26  ;;  %v414_v33 = vld [vmem:[#allocation10 + $0x2c8] sm:$0xff]  ;;  %v159_v37 = vld [vmem:[#allocation10 + $0x2e0] sm:$0xff]  ;;  %v2747_v38 = vcombine.low %v416_v25, %v417_v26 }
  0x67   :  { %v415_v34 = vld [vmem:[#allocation10 + $0x2e8] sm:$0xff]  ;;  %v2710_v43 = vcombine.high %v158_v36, %v159_v37  ;;  %v156_v44 = vld [vmem:[#allocation10 + $0x280] sm:$0xff]  ;;  %v2709_v48 = vcombine.low %v158_v36, %v159_v37 }
  0x68   :  { %v2746_v39 = vcombine.high %v414_v33, %v415_v34  ;;  %v412_v41 = vld [vmem:[#allocation10 + $0x288] sm:$0xff]  ;;  %v157_v45 = vld [vmem:[#allocation10 + $0x2a0] sm:$0xff]  ;;  %v2745_v46 = vcombine.low %v414_v33, %v415_v34 }
  0x69   :  { %628 = vmatpush1.bf16.msra.mxu1 %v2725_v61  ;;  %352 = vmatpush1.bf16.msra.mxu0 %v2689_v0  ;;  %v413_v42 = vld [vmem:[#allocation10 + $0x2a8] sm:$0xff]  ;;  %v2708_v51 = vcombine.high %v156_v44, %v157_v45  ;;  %v154_v52 = vld [vmem:[#allocation10 + $0x240] sm:$0xff]  ;;  %v2707_v56 = vcombine.low %v156_v44, %v157_v45  ;;  %v682_v45 = vld [vmem:[#allocation10 + $0x1d0] sm:$0xff] }
  0x6a   :  { %629 = vmatprep.subr.bf16.mxu1 %v2724_v63  ;;  %353 = vmatprep.subr.bf16.mxu0 %v2688_v3  ;;  %v2744_v47 = vcombine.high %v412_v41, %v413_v42  ;;  %v410_v49 = vld [vmem:[#allocation10 + $0x248] sm:$0xff]  ;;  %v155_v53 = vld [vmem:[#allocation10 + $0x260] sm:$0xff]  ;;  %v2743_v54 = vcombine.low %v412_v41, %v413_v42 }
  0x6b   :  { %v411_v50 = vld [vmem:[#allocation10 + $0x268] sm:$0xff]  ;;  %v2706_v59 = vcombine.high %v154_v52, %v155_v53  ;;  %v152_v60 = vld [vmem:[#allocation10 + $0x200] sm:$0xff]  ;;  %v2705_v0 = vcombine.low %v154_v52, %v155_v53  ;;  %v678_v52 = vld [vmem:[#allocation10 + $0x150] sm:$0xff] }
  0x6c   :  { %v2742_v55 = vcombine.high %v410_v49, %v411_v50  ;;  %v408_v57 = vld [vmem:[#allocation10 + $0x208] sm:$0xff]  ;;  %v153_v61 = vld [vmem:[#allocation10 + $0x220] sm:$0xff]  ;;  %v2741_v62 = vcombine.low %v410_v49, %v411_v50  ;;  %v681_v50 = vld [vmem:[#allocation10 + $0x1b0] sm:$0xff] }
  0x6d   :  { %630 = vmatpush1.bf16.msra.mxu1 %v2723_v6  ;;  %354 = vmatpush1.bf16.msra.mxu0 %v2687_v8  ;;  %v409_v58 = vld [vmem:[#allocation10 + $0x228] sm:$0xff]  ;;  %v2704_v1 = vcombine.high %v152_v60, %v153_v61  ;;  %v2703_v3 = vcombine.low %v152_v60, %v153_v61  ;;  %v105_v4 = vld [vmem:[#allocation2] sm:$0xff]  ;;  %v2995_v8 = vld [vmem:[#allocation5 + $0x14] ss:$8 sps:$4 sm:$0xff]  }
  0x6e   :  { %631 = vmatprep.subr.bf16.mxu1 %v2754_v7  ;;  %355 = vmatprep.subr.bf16.mxu0 %v2718_v11  ;;  %v2740_v63 = vcombine.high %v408_v57, %v409_v58  ;;  %v2739_v2 = vcombine.low %v408_v57, %v409_v58  ;;  %v2992_v6 = vld [vmem:[#allocation5] ss:$8 sps:$4 sm:$0xff]   ;;  %v113_v7 = vpack.c.bf16 %v107_v5, %v105_v4  ;;  %v169_v11 = vlaneseq  ;;  %v679_v53 = vld [vmem:[#allocation10 + $0x170] sm:$0xff]  ;;  %v3000_v5 = vld [vmem:[#allocation7 + $0x4] ss:$8 sps:$4 sm:$0xff]  }
  0x6f   :  { %v677_v57 = vld [vmem:[#allocation10 + $0x130] sm:$0xff]  ;;  %v2769_v58 = vcombine.low %v678_v52, %v679_v53  ;;  %v110_v61 = vld [vmem:[#allocation2 + $0x28] sm:$0xff] }
  0x70   :  { %v170_v12 = vshrl.u32 %v169_v11, 7  ;;  %v674_v60 = vld [vmem:[#allocation10 + $0xd0] sm:$0xff] }
  0x71   :  { %632 = vmatpush2.bf16.msra.mxu1 %v2753_v14  ;;  %356 = vmatpush2.bf16.msra.mxu0 %v2717_v16  ;;  %v127_v14 = vld [vmem:[#allocation11 + $0x1] ss:$8 sm:$0x3]  ;;  %v3323_v16 = vld [vmem:[#allocation11] ss:$8 sm:$0x3] }
  0x72   :  { %633 = vmatprep.subr.bf16.mxu1 %v2752_v15  ;;  %357 = vmatprep.subr.bf16.mxu0 %v2716_v19  ;;  %v3319_v13 = vsub.s32 0, %v170_v12  ;;  %v3321_v15 = vsub.s32 1, %v170_v12  ;;  %v670_v12 = vld [vmem:[#allocation10 + $0x50] sm:$0xff] }
  0x74   :  { %v428_v18 = vrot.slane %v127_v14, %v3319_v13  ;;  %v3328_v21 = vrot.slane %v3323_v16, %v3319_v13 }
  0x75   :  { %634 = vmatpush2.bf16.msra.mxu1 %v2751_v22  ;;  %358 = vmatpush2.bf16.msra.mxu0 %v2715_v24  ;;  %v3331_v22 = vrot.slane %v127_v14, %v3321_v15  ;;  %v671_v14 = vld [vmem:[#allocation10 + $0x70] sm:$0xff] }
  0x76   :  { %635 = vmatprep.subr.bf16.mxu1 %v2750_v23  ;;  %359 = vmatprep.subr.bf16.mxu0 %v2714_v27 }
  0x79   :  { %636 = vmatpush2.bf16.msra.mxu1 %v2749_v30  ;;  %360 = vmatpush2.bf16.msra.mxu0 %v2713_v32 }
  0x7a   :  { %637 = vmatprep.subr.bf16.mxu1 %v2748_v31  ;;  %361 = vmatprep.subr.bf16.mxu0 %v2712_v35 }
  0x7d   :  { %638 = vmatpush2.bf16.msra.mxu1 %v2747_v38  ;;  %362 = vmatpush2.bf16.msra.mxu0 %v2711_v40 }
  0x7e   :  { %639 = vmatprep.subr.bf16.mxu1 %v2746_v39  ;;  %363 = vmatprep.subr.bf16.mxu0 %v2710_v43 }
  0x81   :  { %640 = vmatpush2.bf16.msra.mxu1 %v2745_v46  ;;  %364 = vmatpush2.bf16.msra.mxu0 %v2709_v48  ;;  %v683_v46 = vld [vmem:[#allocation10 + $0x1f0] sm:$0xff] }
  0x82   :  { %641 = vmatprep.subr.bf16.mxu1 %v2744_v47  ;;  %365 = vmatprep.subr.bf16.mxu0 %v2708_v51  ;;  %v680_v47 = vld [vmem:[#allocation10 + $0x190] sm:$0xff]  ;;  %v2773_v48 = vcombine.low %v682_v45, %v683_v46  ;;  %v2774_v49 = vcombine.high %v682_v45, %v683_v46 }
  0x83   :  { %v2772_v51 = vcombine.high %v680_v47, %v681_v50 }
  0x85   :  { %642 = vmatpush2.bf16.msra.mxu1 %v2743_v54  ;;  %366 = vmatpush2.bf16.msra.mxu0 %v2707_v56  ;;  %v2771_v54 = vcombine.low %v680_v47, %v681_v50  ;;  %v676_v56 = vld [vmem:[#allocation10 + $0x110] sm:$0xff] }
  0x86   :  { %643 = vmatprep.subr.bf16.mxu1 %v2742_v55  ;;  %367 = vmatprep.subr.bf16.mxu0 %v2706_v59  ;;  %v2770_v55 = vcombine.high %v678_v52, %v679_v53  ;;  %v2768_v59 = vcombine.high %v676_v56, %v677_v57  ;;  %v2767_v4 = vcombine.low %v676_v56, %v677_v57  ;;  %v690_v47 = vld [vmem:[#allocation10 + $0x2d0] sm:$0xff] }
  0x87   :  { %v689_v52 = vld [vmem:[#allocation10 + $0x2b0] sm:$0xff] }
  0x88   :  { %v687_v56 = vld [vmem:[#allocation10 + $0x270] sm:$0xff] }
  0x89   :  { %644 = vmatpush2.bf16.msra.mxu1 %v2741_v62  ;;  %368 = vmatpush2.bf16.msra.mxu0 %v2705_v0  ;;  %v112_v62 = vld [vmem:[#allocation2 + $0x38] sm:$0xff] }
  0x8a   :  { %645 = vmatprep.subr.bf16.mxu1 %v2740_v63  ;;  %369 = vmatprep.subr.bf16.mxu0 %v2704_v1  ;;  %v675_v63 = vld [vmem:[#allocation10 + $0xf0] sm:$0xff]  ;;  %v116_v0 = vpack.c.bf16 %v112_v62, %v110_v61  ;;  %v109_v1 = vld [vmem:[#allocation2 + $0x20] sm:$0xff] }
  0x8d   :  { %646 = vmatpush2.bf16.msra.mxu1 %v2739_v2  ;;  %370 = vmatpush2.bf16.msra.mxu0 %v2703_v3  ;;  %v111_v2 = vld [vmem:[#allocation2 + $0x30] sm:$0xff] }
  0x8e   :  { %2879 = vmatprep.subr.bf16.mxu1 %v3246_v10  ;;  %891 = vmatprep.subr.bf16.mxu0 %v2774_v49  ;;  %v115_v3 = vpack.c.bf16 %v111_v2, %v109_v1  ;;  %v3358_v2 = vld [vmem:[#allocation8] sm:$0xff] }
  0x90   :  { %648 = vmatmul.mubr.bf16.vlgmr.msra.gmra.mxu1 %v2992_v6  ;;  %372 = vmatmul.mubr.bf16.vlgmr.msra.gmra.mxu0 %v113_v7  ;;  %v2766_v6 = vcombine.high %v674_v60, %v675_v63  ;;  %v672_v7 = vld [vmem:[#allocation10 + $0x90] sm:$0xff] }
  0x91   :  { %657 = vmatprep.mubr.bf16.mxu1 %v2995_v8  ;;  %892 = vmatpush1.bf16.msra.mxu0 %v2773_v48  ;;  %v673_v8 = vld [vmem:[#allocation10 + $0xb0] sm:$0xff] }
  0x92   :  { %893 = vmatprep.subr.bf16.mxu0 %v2772_v51  ;;  %381 = vmatprep.mubr.bf16.mxu0 %v116_v0  ;;  %v2764_v11 = vcombine.high %v672_v7, %v673_v8  ;;  %v691_v48 = vld [vmem:[#allocation10 + $0x2f0] sm:$0xff]  ;;  %v2998_v0 = vld [vmem:[#allocation7] ss:$8 sps:$4 sm:$0xff]  }
  0x93   :  { %v2782_v50 = vcombine.high %v690_v47, %v691_v48  ;;  %v688_v51 = vld [vmem:[#allocation10 + $0x290] sm:$0xff]  ;;  %v2781_v53 = vcombine.low %v690_v47, %v691_v48 }
  0x94   :  { %v2779_v57 = vcombine.low %v688_v51, %v689_v52 }
  0x95   :  { %894 = vmatpush1.bf16.msra.mxu0 %v2771_v54  ;;  %v2780_v54 = vcombine.high %v688_v51, %v689_v52 }
  0x96   :  { %895 = vmatprep.subr.bf16.mxu0 %v2770_v55  ;;  %v686_v55 = vld [vmem:[#allocation10 + $0x250] sm:$0xff] }
  0x97   :  { %v2777_v61 = vcombine.low %v686_v55, %v687_v56 }
  0x98   :  { %658 = vmatmul.mubr.bf16.gmra.mxu1 %v2997_v9  ;;  %382 = vmatmul.mubr.bf16.gmra.mxu0 %v115_v3  ;;  %v2765_v9 = vcombine.low %v674_v60, %v675_v63  ;;  %v685_v60 = vld [vmem:[#allocation10 + $0x230] sm:$0xff] }
  0x99   :  { %2881 = vmatprep.mubr.msk.bf16.mxu1 %vm3247_vm0, %v3246_v10  ;;  %896 = vmatpush1.bf16.msra.mxu0 %v2769_v58  ;;  %v2778_v58 = vcombine.high %v686_v55, %v687_v56 }
  0x9a   :  { %897 = vmatprep.subr.bf16.mxu0 %v2768_v59  ;;  %923 = vmatprep.mubr.bf16.mxu0 %v3000_v5  ;;  %v684_v59 = vld [vmem:[#allocation10 + $0x210] sm:$0xff] }
  0x9b   :  { %v2776_v62 = vcombine.high %v684_v59, %v685_v60  ;;  %v2775_v63 = vcombine.low %v684_v59, %v685_v60  ;;  %v3397_v59 = vld [vmem:[#allocation8 + $0x20] sm:$0xff]  ;;  %v3399_v60 = vld [vmem:[#allocation8 + $0x28] sm:$0xff] }
  0x9d   :  { %898 = vmatpush1.bf16.msra.mxu0 %v2767_v4 }
  0x9e   :  { %899 = vmatprep.subr.bf16.mxu0 %v2766_v6  ;;  %v3361_v6 = vld [vmem:[#allocation8 + $0x8] sm:$0xff] }
  0xa1   :  { %900 = vmatpush1.bf16.msra.mxu0 %v2765_v9 }
  0xa2   :  { %901 = vmatprep.subr.bf16.mxu0 %v2764_v11 }
 0x150   :  { %v649_v17 = vpop.f32.mrf.mxu1  ;;  %v373_v19 = vpop.f32.mrf.mxu0 }
 0x151   :  { %v650_v25 = vadd.f32 %v649_v17, %v428_v18  ;;  %v374_v27 = vadd.f32 %v373_v19, %v3328_v21  ;;  %v2763_v17 = vcombine.low %v672_v7, %v673_v8  ;;  %v668_v19 = vld [vmem:[#allocation10 + $0x10] sm:$0xff] }
 0x152   :  { %v651_v20 = vpop.f32.mrf.mxu1  ;;  %v3333_v23 = vpop.f32.mrf.mxu0 }
 0x153   :  { %v652_v30 = vadd.f32 %v651_v20, %v3331_v22  ;;  %v944_v36 = vmul.f32 0.125, %v374_v27  ;;  %v669_v20 = vld [vmem:[#allocation10 + $0x30] sm:$0xff]  ;;  %902 = vmatpush1.bf16.msra.mxu0 %v2763_v17 }
 0x154   :  { %v653_v24 = vpop.f32.mrf.mxu1  ;;  %v377_v29 = vpop.f32.mrf.mxu0  ;;  %v699_v27 = vld [vmem:[#allocation10 + $0x3f0] sm:$0xff] }
 0x155   :  { %v654_v26 = vadd.f32 %v653_v24, %v428_v18  ;;  %v378_v33 = vadd.f32 %v377_v29, %v3328_v21  ;;  %v2761_v24 = vcombine.low %v670_v12, %v671_v14 }
 0x156   :  { %v655_v28 = vpop.f32.mrf.mxu1 }
 0x157   :  { %v3337_v31 = vpack.c.bf16 %v654_v26, %v650_v25  ;;  %v656_v32 = vadd.f32 %v655_v28, %v3331_v22  ;;  %v946_v37 = vmul.f32 0.125, %v378_v33  ;;  %v2760_v25 = vcombine.high %v668_v19, %v669_v20  ;;  %v698_v26 = vld [vmem:[#allocation10 + $0x3d0] sm:$0xff] }
 0x158   :  { %v659_v39 = vpop.f32.mrf.mxu1  ;;  %v2759_v28 = vcombine.low %v668_v19, %v669_v20  ;;  %v2790_v29 = vcombine.high %v698_v26, %v699_v27  ;;  %v2789_v33 = vcombine.low %v698_v26, %v699_v27 }
 0x159   :  { %v3341_v34 = vpack.c.bf16 %v656_v32, %v652_v30  ;;  %v974_v35 = vsel %vm969_vm1, %v3337_v31, 0  ;;  %v3346_v38 = vpack.c.bf16 %v946_v37, %v944_v36  ;;  %v660_v41 = vadd.f32 %v659_v39, %v428_v18  ;;  %v696_v30 = vld [vmem:[#allocation10 + $0x390] sm:$0xff] }
 0x15a   :  { %2880 = vmatpush3.bf16.xpose.msra.mxu1 %v974_v35  ;;  %v3352_v40 = vpop.f32.mrf.mxu1  ;;  %v697_v32 = vld [vmem:[#allocation10 + $0x3b0] sm:$0xff] }
 0x15b   :  { %2885 = vmatprep.subr.bf16.mxu1 %v3246_v10  ;;  %v2788_v35 = vcombine.high %v696_v30, %v697_v32  ;;  %v694_v36 = vld [vmem:[#allocation10 + $0x350] sm:$0xff]  ;;  %v2787_v39 = vcombine.low %v696_v30, %v697_v32 }
 0x15c   :  { %v663_v42 = vpop.f32.mrf.mxu1  ;;  %v695_v37 = vld [vmem:[#allocation10 + $0x370] sm:$0xff] }
 0x15d   :  { %v664_v43 = vadd.f32 %v663_v42, %v428_v18  ;;  %v2762_v18 = vcombine.high %v670_v12, %v671_v14  ;;  %v692_v42 = vld [vmem:[#allocation10 + $0x310] sm:$0xff]  ;;  %v2785_v45 = vcombine.low %v694_v36, %v695_v37 }
 0x15e   :  { %v3356_v1 = vpop.f32.mrf.mxu1 }
 0x15f   :  { %v3354_v44 = vpack.c.bf16 %v664_v43, %v660_v41  ;;  %903 = vmatprep.subr.bf16.mxu0 %v2762_v18  ;;  %v2786_v41 = vcombine.high %v694_v36, %v695_v37  ;;  %v693_v43 = vld [vmem:[#allocation10 + $0x330] sm:$0xff] }
 0x160   :  { %904 = vmatpush1.bf16.msra.mxu0 %v2761_v24  ;;  %v2784_v46 = vcombine.high %v692_v42, %v693_v43  ;;  %v2783_v49 = vcombine.low %v692_v42, %v693_v43 }
 0x161   :  { %2882 = vmatmul.mubr.msk.bf16.vlgmr.msra.gmra.mxu1 %vm969_vm1, %v3346_v38  ;;  %905 = vmatprep.subr.bf16.mxu0 %v2760_v25 }
 0x162   :  { %2887 = vmatprep.mubr.msk.bf16.mxu1 %vm3247_vm0, %v3246_v10 }
 0x164   :  { %906 = vmatpush1.bf16.msra.mxu0 %v2759_v28 }
 0x165   :  { %907 = vmatprep.subr.bf16.mxu0 %v2790_v29  ;;  %v3370_v29 = vpop.f32.mrf.mxu0 }
 0x167   :  { %v383_v30 = vpop.f32.mrf.mxu0 }
 0x168   :  { %908 = vmatpush2.bf16.msra.mxu0 %v2789_v33  ;;  %v3374_v33 = vrot.slane %v3323_v16, %v3321_v15  ;;  %v384_v36 = vadd.f32 %v383_v30, %v3328_v21 }
 0x169   :  { %909 = vmatprep.subr.bf16.mxu0 %v2788_v35 }
 0x16a   :  { %v948_v43 = vmul.f32 0.125, %v384_v36 }
 0x16c   :  { %910 = vmatpush2.bf16.msra.mxu0 %v2787_v39 }
 0x16d   :  { %911 = vmatprep.subr.bf16.mxu0 %v2786_v41 }
 0x170   :  { %912 = vmatpush2.bf16.msra.mxu0 %v2785_v45 }
 0x171   :  { %913 = vmatprep.subr.bf16.mxu0 %v2784_v46 }
 0x174   :  { %914 = vmatpush2.bf16.msra.mxu0 %v2783_v49 }
 0x175   :  { %915 = vmatprep.subr.bf16.mxu0 %v2782_v50  ;;  %v3388_v50 = vld [vmem:[#allocation11 + $0x2] ss:$8 sm:$0x3] }
 0x178   :  { %916 = vmatpush2.bf16.msra.mxu0 %v2781_v53 }
 0x179   :  { %917 = vmatprep.subr.bf16.mxu0 %v2780_v54 }
 0x17c   :  { %918 = vmatpush2.bf16.msra.mxu0 %v2779_v57 }
 0x17d   :  { %919 = vmatprep.subr.bf16.mxu0 %v2778_v58 }
 0x180   :  { %920 = vmatpush2.bf16.msra.mxu0 %v2777_v61 }
 0x181   :  { %921 = vmatprep.subr.bf16.mxu0 %v2776_v62 }
 0x184   :  { %922 = vmatpush2.bf16.msra.mxu0 %v2775_v63 }
 0x187   :  { %924 = vmatmul.mubr.bf16.vlgmr.msra.gmra.mxu0 %v2998_v0 }
 0x221   :  { %v1010_v3 = vpop.f32.mrf.mxu1 }
 0x222   :  { %v1011_v4 = vadd.f32 %v1010_v3, %v3358_v2 }
 0x223   :  { %v2883_v5 = vpop.f32.mrf.mxu1 }
 0x224   :  { %v1018_v7 = vsel %vm1017_vm2, %v1011_v4, -inf }
 0x225   :  { %1019 = vmax.xlane.f32.xlu0 %v1018_v7  ;;  %v1013_v8 = vpop.f32.mrf.mxu1 }
 0x226   :  { %v1014_v9 = vadd.f32 %v1013_v8, %v3361_v6 }
 0x227   :  { %v2884_v11 = vpop.f32.mrf.mxu1 }
 0x228   :  { %v1021_v12 = vsel %vm1017_vm2, %v1014_v9, -inf }
 0x229   :  { %1022 = vmax.xlane.f32.xlu0 %v1021_v12 }
 0x23f   :  { %1100 = vrot.lane.b32.xlu0 %v3337_v31, %s3248_s4  ;;  %v385_v31 = vpop.f32.mrf.mxu0 }
 0x240   :  { %v386_v37 = vadd.f32 %v385_v31, %v3374_v33 }
 0x241   :  { %v387_v32 = vpop.f32.mrf.mxu0 }
 0x242   :  { %v388_v39 = vadd.f32 %v387_v32, %v3328_v21  ;;  %v949_v45 = vmul.f32 0.125, %v386_v37  ;;  %v3392_v21 = vrot.slane %v3388_v50, %v3319_v13 }
 0x243   :  { %v389_v35 = vpop.f32.mrf.mxu0 }
 0x244   :  { %v390_v41 = vadd.f32 %v389_v35, %v3374_v33  ;;  %v950_v46 = vmul.f32 0.125, %v388_v39 }
 0x246   :  { %v951_v47 = vmul.f32 0.125, %v390_v41  ;;  %v3382_v49 = vpack.c.bf16 %v950_v46, %v948_v43  ;;  %v380_v43 = vadd.f32 %v3370_v29, %v3374_v33 }
 0x247   :  { %v925_v42 = vpop.f32.mrf.mxu0 }
 0x248   :  { %v3384_v16 = vpack.c.bf16 %v951_v47, %v949_v45  ;;  %v926_v52 = vadd.f32 %v925_v42, %v3392_v21  ;;  %v376_v42 = vadd.f32 %v3333_v23, %v3374_v33  ;;  %v947_v46 = vmul.f32 0.125, %v380_v43  ;;  %v1090_v43 = vld [vmem:[#allocation10 + $0x78] sm:$0xff] }
 0x249   :  { %v3380_v48 = vpop.f32.mrf.mxu0 }
 0x24a   :  { %v945_v45 = vmul.f32 0.125, %v376_v42  ;;  %v1089_v42 = vld [vmem:[#allocation10 + $0x58] sm:$0xff] }
 0x24b   :  { %v929_v51 = vpop.f32.mrf.mxu0 }
 0x24c   :  { %v930_v53 = vadd.f32 %v929_v51, %v3392_v21  ;;  %v3428_v47 = vpack.c.bf16 %v947_v46, %v945_v45  ;;  %v1228_v51 = vld [vmem:[#allocation10 + $0x1d8] sm:$0xff]  ;;  %v3473_v46 = vcombine.high %v1089_v42, %v1090_v43 }
 0x24e   :  { %v960_v54 = vpack.c.bf16 %v930_v53, %v926_v52  ;;  %v1229_v52 = vld [vmem:[#allocation10 + $0x1f8] sm:$0xff] }
 0x250   :  { %2886 = vmatpush3.bf16.msra.mxu1 %v960_v54 }
 0x251   :  { %2891 = vmatprep.subr.bf16.mxu1 %v3246_v10 }
 0x2ae   :  { %v1020_v14 = vpop.xlane.xlu0 %1019 }
 0x2af   :  { %v1024_v17 = vsub.f32 %v1011_v4, %v1020_v14 }
 0x2b1   :  { %v1026_v18 = vmul.f32 1.442695, %v1024_v17 }
 0x2b2   :  { %v1023_v19 = vpop.xlane.xlu0 %1022 }
 0x2b3   :  { %3004 = vpow2.f32 %v1026_v18  ;;  %v1025_v20 = vsub.f32 %v1014_v9, %v1023_v19 }
 0x2b5   :  { %v1028_v24 = vmul.f32 1.442695, %v1025_v20 }
 0x2b6   :  { %v1101_v0 = vpop.permute.xlu0 %1100 }
 0x2b7   :  { %3006 = vpow2.f32 %v1028_v24  ;;  %v1106_v4 = vsel %vm969_vm1, %v1101_v0, 0 }
 0x2c0   :  { %v3005_v25 = vpop.eup %3004 }
 0x2c1   :  { %v1030_v26 = vsel %vm1017_vm2, %v3005_v25, 0.0 }
 0x2c2   :  { %1031 = vadd.xlane.f32.xlu1 %v1030_v26 }
 0x2c4   :  { %v3007_v27 = vpop.eup %3006 }
 0x2c5   :  { %v1033_v28 = vsel %vm1017_vm2, %v3007_v27, 0.0 }
 0x2c6   :  { %1034 = vadd.xlane.f32.xlu1 %v1033_v28 }
 0x2d7   :  { %1097 = vrot.lane.b32.xlu1 %v3346_v38, %s3248_s4 }
 0x34b   :  { %v1032_v55 = vpop.xlane.xlu1 %1031 }
 0x34c   :  { %3008 = vrcp.f32 %v1032_v55  ;;  %v3432_v55 = vcombine.high %v1228_v51, %v1229_v52 }
 0x34f   :  { %v1035_v56 = vpop.xlane.xlu1 %1034 }
 0x350   :  { %3010 = vrcp.f32 %v1035_v56 }
 0x353   :  { %v1098_v5 = vpop.permute.xlu1 %1097 }
 0x359   :  { %v3009_v38 = vpop.eup %3008 }
 0x35a   :  { %v1038_v57 = vmul.f32 %v3009_v38, %v3005_v25 }
 0x35c   :  { %v1040_v62 = vmul.f32 %v1038_v57, %v3397_v59  ;;  %v1226_v57 = vld [vmem:[#allocation10 + $0x198] sm:$0xff] }
 0x35d   :  { %v3011_v58 = vpop.eup %3010 }
 0x35e   :  { %v1039_v61 = vmul.f32 %v3011_v58, %v3007_v27  ;;  %v1227_v58 = vld [vmem:[#allocation10 + $0x1b8] sm:$0xff] }
 0x360   :  { %v1041_v63 = vmul.f32 %v1039_v61, %v3399_v60 }
 0x362   :  { %v1042_v3 = vpack.c.bf16 %v1041_v63, %v1040_v62  ;;  %v3437_v63 = vcombine.low %v1228_v51, %v1229_v52  ;;  %v1087_v51 = vld [vmem:[#allocation10 + $0x18] sm:$0xff] }
 0x363   :  { %v1088_v52 = vld [vmem:[#allocation10 + $0x38] sm:$0xff] }
 0x364   :  { %2888 = vmatmul.mubr.msk.bf16.vlgmr.msra.gmra.mxu1 %vm1017_vm2, %v1042_v3  ;;  %v3439_v3 = vcombine.high %v1226_v57, %v1227_v58 }
 0x365   :  { %2892 = vmatpush3.bf16.xpose.msra.mxu1 %v1106_v4  ;;  %2893 = vmatprep.mubr.msk.bf16.mxu1 %vm3247_vm0, %v3246_v10  ;;  %v1224_v4 = vld [vmem:[#allocation10 + $0x158] sm:$0xff] }
 0x366   :  { %2897 = vmatprep.subr.bf16.mxu1 %v3246_v10 }
 0x36c   :  { %2894 = vmatmul.mubr.msk.bf16.vlgmr.msra.gmra.mxu1 %vm969_vm1, %v1098_v5  ;;  %v1225_v5 = vld [vmem:[#allocation10 + $0x178] sm:$0xff] }
 0x36d   :  { %2899 = vmatprep.mubr.msk.bf16.mxu1 %vm3247_vm0, %v3246_v10 }
 0x424   :  { %v3411_v7 = vpop.f32.mrf.mxu1 }
 0x426   :  { %v2889_v8 = vpop.f32.mrf.mxu1 }
 0x427   :  { %v3443_v8 = vcombine.low %v1226_v57, %v1227_v58 }
 0x428   :  { %v3413_v9 = vpop.f32.mrf.mxu1 }
 0x429   :  { %v1095_v11 = vpack.c.bf16 %v3413_v9, %v3411_v7 }
 0x42a   :  { %v2890_v12 = vpop.f32.mrf.mxu1 }
 0x42b   :  { %v3446_v12 = vcombine.high %v1224_v4, %v1225_v5 }
 0x42c   :  { %v1142_v14 = vpop.f32.mrf.mxu1 }
 0x42d   :  { %v1143_v17 = vadd.f32 %v1142_v14, %v3358_v2  ;;  %v3449_v14 = vcombine.low %v1224_v4, %v1225_v5 }
 0x42e   :  { %v2895_v18 = vpop.f32.mrf.mxu1 }
 0x42f   :  { %v1149_v19 = vsel %vm1017_vm2, %v1143_v17, -inf  ;;  %v1223_v18 = vld [vmem:[#allocation10 + $0x138] sm:$0xff] }
 0x430   :  { %1150 = vmax.xlane.f32.xlu1 %v1149_v19  ;;  %v1145_v20 = vpop.f32.mrf.mxu1 }
 0x431   :  { %v1146_v24 = vadd.f32 %v1145_v20, %v3361_v6 }
 0x432   :  { %v2896_v25 = vpop.f32.mrf.mxu1 }
 0x433   :  { %v1152_v26 = vsel %vm1017_vm2, %v1146_v24, -inf  ;;  %v1094_v25 = vld [vmem:[#allocation10 + $0xf8] sm:$0xff] }
 0x434   :  { %1153 = vmax.xlane.f32.xlu0 %v1152_v26 }
 0x4b9   :  { %v1151_v27 = vpop.xlane.xlu1 %1150 }
 0x4ba   :  { %v1155_v28 = vsub.f32 %v1143_v17, %v1151_v27  ;;  %v1222_v17 = vld [vmem:[#allocation10 + $0x118] sm:$0xff] }
 0x4bb   :  { %v3453_v19 = vcombine.high %v1222_v17, %v1223_v18  ;;  %v3455_v20 = vcombine.low %v1222_v17, %v1223_v18 }
 0x4bc   :  { %v1157_v30 = vmul.f32 1.442695, %v1155_v28  ;;  %v3249_v28 = vmov 0  }
 0x4bd   :  { %v1154_v31 = vpop.xlane.xlu0 %1153 }
 0x4be   :  { %3012 = vpow2.f32 %v1157_v30  ;;  %v1156_v32 = vsub.f32 %v1146_v24, %v1154_v31  ;;  %v1093_v24 = vld [vmem:[#allocation10 + $0xd8] sm:$0xff] }
 0x4bf   :  { %v3459_v26 = vcombine.high %v1093_v24, %v1094_v25  ;;  %v3461_v27 = vcombine.low %v1093_v24, %v1094_v25 }
 0x4c0   :  { %v1159_v35 = vmul.f32 1.442695, %v1156_v32  ;;  %v1091_v32 = vld [vmem:[#allocation10 + $0x98] sm:$0xff] }
 0x4c2   :  { %3014 = vpow2.f32 %v1159_v35  ;;  %v1092_v35 = vld [vmem:[#allocation10 + $0xb8] sm:$0xff] }
 0x4c3   :  { %v3469_v45 = vcombine.low %v1091_v32, %v1092_v35 }
 0x4cb   :  { %v3013_v36 = vpop.eup %3012 }
 0x4cc   :  { %v1161_v37 = vsel %vm1017_vm2, %v3013_v36, 0.0 }
 0x4cd   :  { %1162 = vadd.xlane.f32.xlu0 %v1161_v37 }
 0x4cf   :  { %v3015_v39 = vpop.eup %3014 }
 0x4d0   :  { %v1164_v41 = vsel %vm1017_vm2, %v3015_v39, 0.0 }
 0x4d1   :  { %1165 = vadd.xlane.f32.xlu1 %v1164_v41 }
 0x4e3   :  { %1175 = vrot.lane.b32.xlu0 %v960_v54, %s3248_s4 }
 0x4e7   :  { %1619 = vrot.lane.b32.xlu0 %v3428_v47, %s3248_s4 }
 0x556   :  { %v1163_v53 = vpop.xlane.xlu0 %1162 }
 0x557   :  { %3016 = vrcp.f32 %v1163_v53  ;;  %v3476_v53 = vcombine.low %v1089_v42, %v1090_v43 }
 0x55a   :  { %v1166_v56 = vpop.xlane.xlu1 %1165  ;;  %v1176_v23 = vpop.permute.xlu0 %1175 }
 0x55b   :  { %3018 = vrcp.f32 %v1166_v56  ;;  %2898 = vmatpush3.bf16.msra.mxu1 %v1176_v23  ;;  %v3479_v56 = vcombine.high %v1087_v51, %v1088_v52  ;;  %v3482_v23 = vcombine.low %v1087_v51, %v1088_v52 }
 0x55c   :  { %1282 = vmatprep.subr.bf16.mxu1 %v3432_v55 }
 0x564   :  { %v3017_v29 = vpop.eup %3016 }
 0x565   :  { %v1169_v33 = vmul.f32 %v3017_v29, %v3013_v36  ;;  %v3489_v29 = vrot.slane %v3388_v50, %v3321_v15 }
 0x567   :  { %v1171_v61 = vmul.f32 %v1169_v33, %v3397_v59  ;;  %v931_v33 = vpop.f32.mrf.mxu0 }
 0x568   :  { %v3019_v54 = vpop.eup %3018  ;;  %v932_v50 = vadd.f32 %v931_v33, %v3489_v29 }
 0x569   :  { %v1170_v38 = vmul.f32 %v3019_v54, %v3015_v39  ;;  %v3465_v39 = vcombine.high %v1091_v32, %v1092_v35  ;;  %v1407_v54 = vsel %vm969_vm1, %v3341_v34, 0 }
 0x56b   :  { %v1172_v62 = vmul.f32 %v1170_v38, %v3399_v60  ;;  %v928_v38 = vadd.f32 %v3380_v48, %v3489_v29 }
 0x56d   :  { %v1173_v0 = vpack.c.bf16 %v1172_v62, %v1171_v61  ;;  %v3503_v57 = vpack.c.bf16 %v932_v50, %v928_v38 }
 0x56f   :  { %2900 = vmatmul.mubr.msk.bf16.vlgmr.msra.gmra.mxu1 %vm1017_vm2, %v1173_v0 }
 0x570   :  { %1283 = vmatpush1.bf16.msra.mxu1 %v3437_v63  ;;  %1306 = vmatprep.mubr.bf16.mxu1 %v3249_v28 }
 0x571   :  { %1284 = vmatprep.subr.bf16.mxu1 %v3439_v3 }
 0x574   :  { %1285 = vmatpush1.bf16.msra.mxu1 %v3443_v8 }
 0x575   :  { %1286 = vmatprep.subr.bf16.mxu1 %v3446_v12 }
 0x578   :  { %1287 = vmatpush1.bf16.msra.mxu1 %v3449_v14 }
 0x579   :  { %1288 = vmatprep.subr.bf16.mxu1 %v3453_v19 }
 0x57c   :  { %1289 = vmatpush1.bf16.msra.mxu1 %v3455_v20 }
 0x57d   :  { %1368 = vmatprep.subr.bf16.mxu1 %v3459_v26 }
 0x62f   :  { %v1215_v30 = vpop.f32.mrf.mxu1 }
 0x631   :  { %v2901_v31 = vpop.f32.mrf.mxu1 }
 0x633   :  { %v1218_v36 = vpop.f32.mrf.mxu1 }
 0x634   :  { %v1230_v37 = vpack.c.bf16 %v1218_v36, %v1215_v30 }
 0x635   :  { %v2902_v41 = vpop.f32.mrf.mxu1 }
 0x636   :  { %2803 = vmatmul.mubr.msk.bf16.vlgmr.msra.gmra.mxu1 %vm969_vm1, %v1230_v37 }
 0x637   :  { %1369 = vmatpush1.bf16.msra.mxu1 %v3461_v27  ;;  %1392 = vmatprep.mubr.bf16.mxu1 %v3249_v28 }
 0x638   :  { %1370 = vmatprep.subr.bf16.mxu1 %v3465_v39 }
 0x63b   :  { %1371 = vmatpush1.bf16.msra.mxu1 %v3469_v45 }
 0x63c   :  { %1372 = vmatprep.subr.bf16.mxu1 %v3473_v46 }
 0x63f   :  { %1373 = vmatpush1.bf16.msra.mxu1 %v3476_v53 }
 0x640   :  { %1374 = vmatprep.subr.bf16.mxu1 %v3479_v56 }
 0x643   :  { %1375 = vmatpush1.bf16.msra.mxu1 %v3482_v23 }
 0x644   :  { %2903 = vmatprep.subr.bf16.mxu1 %v3246_v10 }
 0x646   :  { %2812 = vmatmul.mubr.msk.bf16.vlgmr.msra.gmra.mxu1 %vm969_vm1, %v1095_v11 }
 0x647   :  { %2904 = vmatpush3.bf16.xpose.msra.mxu1 %v1407_v54  ;;  %2905 = vmatprep.mubr.msk.bf16.mxu1 %vm3247_vm0, %v3246_v10 }
 0x648   :  { %2909 = vmatprep.subr.bf16.mxu1 %v3246_v10 }
 0x64e   :  { %2906 = vmatmul.mubr.msk.bf16.vlgmr.msra.gmra.mxu1 %vm969_vm1, %v3428_v47 }
 0x64f   :  { %2910 = vmatpush3.bf16.msra.mxu1 %v3503_v57  ;;  %2911 = vmatprep.mubr.msk.bf16.mxu1 %vm3247_vm0, %v3246_v10 }
 0x650   :  { %2915 = vmatprep.subr.bf16.mxu1 %v3246_v10 }
 0x6f6   :  { %v1308_v7 = vpop.f32.mrf.mxu1 }
 0x6f8   :  { %v1310_v9 = vpop.f32.mrf.mxu1 }
 0x6fa   :  { %v1312_v11 = vpop.f32.mrf.mxu1 }
 0x6fc   :  { %v1314_v58 = vpop.f32.mrf.mxu1 }
 0x706   :  { %v1394_v61 = vpop.f32.mrf.mxu1 }
 0x707   :  { %v3511_v48 = vadd.f32 %v1394_v61, %v1308_v7  ;;  %v1525_v7 = vld [vmem:[#allocation10 + $0x2d8] sm:$0xff] }
 0x708   :  { %v1396_v62 = vpop.f32.mrf.mxu1 }
 0x709   :  { %v3513_v0 = vadd.f32 %v1396_v62, %v1310_v9  ;;  %v1526_v9 = vld [vmem:[#allocation10 + $0x2f8] sm:$0xff] }
 0x70a   :  { %v1398_v4 = vpop.f32.mrf.mxu1  ;;  %v3529_v61 = vcombine.high %v1525_v7, %v1526_v9  ;;  %v1524_v62 = vld [vmem:[#allocation10 + $0x2b8] sm:$0xff] }
 0x70b   :  { %v3515_v5 = vadd.f32 %v1398_v4, %v1312_v11  ;;  %v1523_v11 = vld [vmem:[#allocation10 + $0x298] sm:$0xff] }
 0x70c   :  { %v1400_v47 = vpop.f32.mrf.mxu1  ;;  %v3001_v4 = vld [vmem:[#allocation7 + $0x14] ss:$8 sps:$4 sm:$0xff]   ;;  %1579 = vmatprep.subr.bf16.mxu0 %v3529_v61 }
 0x70d   :  { %v3517_v17 = vadd.f32 %v1400_v47, %v1314_v58  ;;  %v3527_v58 = vcombine.low %v1525_v7, %v1526_v9  ;;  %v3003_v47 = vld [vmem:[#allocation7 + $0x10] ss:$8 sps:$4 sm:$0xff]   ;;  %933 = vmatprep.mubr.bf16.mxu0 %v3001_v4  ;;  %v1620_v7 = vpop.permute.xlu0 %1619 }
 0x70e   :  { %v1443_v18 = vpop.f32.mrf.mxu1  ;;  %934 = vmatmul.mubr.bf16.gmra.mxu0 %v3003_v47 }
 0x70f   :  { %v1444_v24 = vadd.f32 %v1443_v18, %v3358_v2  ;;  %v3531_v18 = vcombine.high %v1523_v11, %v1524_v62  ;;  %1580 = vmatpush1.bf16.msra.mxu0 %v3527_v58  ;;  %1603 = vmatprep.mubr.bf16.mxu0 %v3249_v28 }
 0x710   :  { %v2907_v25 = vpop.f32.mrf.mxu1 }
 0x711   :  { %v1450_v30 = vsel %vm1017_vm2, %v1444_v24, -inf  ;;  %v1522_v25 = vld [vmem:[#allocation10 + $0x278] sm:$0xff]  ;;  %1581 = vmatprep.subr.bf16.mxu0 %v3531_v18 }
 0x712   :  { %1451 = vmax.xlane.f32.xlu1 %v1450_v30  ;;  %v1446_v31 = vpop.f32.mrf.mxu1 }
 0x713   :  { %v1447_v32 = vadd.f32 %v1446_v31, %v3361_v6 }
 0x714   :  { %v2908_v35 = vpop.f32.mrf.mxu1 }
 0x715   :  { %v1453_v36 = vsel %vm1017_vm2, %v1447_v32, -inf }
 0x716   :  { %1454 = vmax.xlane.f32.xlu1 %v1453_v36 }
 0x79b   :  { %v1452_v37 = vpop.xlane.xlu1 %1451 }
 0x79c   :  { %v1456_v41 = vsub.f32 %v1444_v24, %v1452_v37  ;;  %v1521_v24 = vld [vmem:[#allocation10 + $0x258] sm:$0xff] }
 0x79d   :  { %v3538_v30 = vcombine.high %v1521_v24, %v1522_v25  ;;  %v3542_v31 = vcombine.low %v1521_v24, %v1522_v25 }
 0x79e   :  { %v1458_v42 = vmul.f32 1.442695, %v1456_v41 }
 0x79f   :  { %v1455_v43 = vpop.xlane.xlu1 %1454 }
 0x7a0   :  { %3020 = vpow2.f32 %v1458_v42  ;;  %v1457_v51 = vsub.f32 %v1447_v32, %v1455_v43 }
 0x7a2   :  { %v1460_v52 = vmul.f32 1.442695, %v1457_v51 }
 0x7a4   :  { %3022 = vpow2.f32 %v1460_v52 }
 0x7ad   :  { %v3021_v33 = vpop.eup %3020 }
 0x7ae   :  { %v1462_v54 = vsel %vm1017_vm2, %v3021_v33, 0.0 }
 0x7af   :  { %1463 = vadd.xlane.f32.xlu1 %v1462_v54 }
 0x7b1   :  { %v3023_v38 = vpop.eup %3022 }
 0x7b2   :  { %v1465_v50 = vsel %vm1017_vm2, %v3023_v38, 0.0 }
 0x7b3   :  { %1466 = vadd.xlane.f32.xlu1 %v1465_v50 }
 0x7c4   :  { %1622 = vrot.lane.b32.xlu1 %v3341_v34, %s3248_s4  ;;  %v3535_v34 = vcombine.low %v1523_v11, %v1524_v62 }
 0x7c6   :  { %1582 = vmatpush1.bf16.msra.mxu0 %v3535_v34 }
 0x7c7   :  { %1583 = vmatprep.subr.bf16.mxu0 %v3538_v30 }
 0x7ca   :  { %1584 = vmatpush1.bf16.msra.mxu0 %v3542_v31 }
 0x838   :  { %v1464_v32 = vpop.xlane.xlu1 %1463 }
 0x839   :  { %3024 = vrcp.f32 %v1464_v32 }
 0x83c   :  { %v1467_v35 = vpop.xlane.xlu1 %1466 }
 0x83d   :  { %3026 = vrcp.f32 %v1467_v35 }
 0x840   :  { %v1623_v52 = vpop.permute.xlu1 %1622 }
 0x841   :  { %v1628_v50 = vsel %vm969_vm1, %v1623_v52, 0 }
 0x846   :  { %v3025_v36 = vpop.eup %3024 }
 0x847   :  { %v1470_v37 = vmul.f32 %v3025_v36, %v3021_v33  ;;  %v1519_v33 = vld [vmem:[#allocation10 + $0x218] sm:$0xff] }
 0x849   :  { %v1472_v43 = vmul.f32 %v1470_v37, %v3397_v59 }
 0x84a   :  { %v3027_v41 = vpop.eup %3026 }
 0x84b   :  { %v1471_v42 = vmul.f32 %v3027_v41, %v3023_v38  ;;  %v1520_v38 = vld [vmem:[#allocation10 + $0x238] sm:$0xff] }
 0x84c   :  { %v3556_v9 = vcombine.low %v1519_v33, %v1520_v38  ;;  %v3558_v11 = vcombine.high %v1519_v33, %v1520_v38 }
 0x84d   :  { %v1473_v51 = vmul.f32 %v1471_v42, %v3399_v60 }
 0x84e   :  { %1585 = vmatprep.subr.bf16.mxu0 %v3558_v11 }
 0x84f   :  { %v1474_v54 = vpack.c.bf16 %v1473_v51, %v1472_v43  ;;  %1586 = vmatpush1.bf16.msra.mxu0 %v3556_v9 }
 0x851   :  { %2912 = vmatmul.mubr.msk.bf16.vlgmr.msra.gmra.mxu1 %vm1017_vm2, %v1474_v54 }
 0x852   :  { %2916 = vmatpush3.bf16.xpose.msra.mxu1 %v1628_v50  ;;  %2917 = vmatprep.mubr.msk.bf16.mxu1 %vm3247_vm0, %v3246_v10 }
 0x853   :  { %2921 = vmatprep.subr.bf16.mxu1 %v3246_v10 }
 0x859   :  { %2918 = vmatmul.mubr.msk.bf16.vlgmr.msra.gmra.mxu1 %vm969_vm1, %v1620_v7 }
 0x85a   :  { %2923 = vmatprep.mubr.msk.bf16.mxu1 %vm3247_vm0, %v3246_v10 }
 0x911   :  { %v1512_v62 = vpop.f32.mrf.mxu1 }
 0x913   :  { %v2913_v4 = vpop.f32.mrf.mxu1 }
 0x915   :  { %v1515_v47 = vpop.f32.mrf.mxu1 }
 0x916   :  { %v1527_v24 = vpack.c.bf16 %v1515_v47, %v1512_v62  ;;  %v935_v47 = vpop.f32.mrf.mxu0 }
 0x917   :  { %v2914_v25 = vpop.f32.mrf.mxu1 }
 0x918   :  { %2823 = vmatmul.mubr.msk.bf16.vlgmr.msra.gmra.mxu0 %vm969_vm1, %v1527_v24  ;;  %v3574_v24 = vpop.f32.mrf.mxu0 }
 0x919   :  { %v1664_v32 = vpop.f32.mrf.mxu1  ;;  %1828 = vmatprep.mubr.bf16.mxu0 %v3249_v28 }
 0x91a   :  { %v1665_v35 = vadd.f32 %v1664_v32, %v3358_v2  ;;  %v939_v25 = vpop.f32.mrf.mxu0 }
 0x91b   :  { %v2919_v36 = vpop.f32.mrf.mxu1 }
 0x91c   :  { %v1671_v37 = vsel %vm1017_vm2, %v1665_v35, -inf  ;;  %v3578_v32 = vpop.f32.mrf.mxu0 }
 0x91d   :  { %1672 = vmax.xlane.f32.xlu0 %v1671_v37  ;;  %v1667_v41 = vpop.f32.mrf.mxu1 }
 0x91e   :  { %v1668_v42 = vadd.f32 %v1667_v41, %v3361_v6 }
 0x91f   :  { %v2920_v43 = vpop.f32.mrf.mxu1 }
 0x920   :  { %v1674_v51 = vsel %vm1017_vm2, %v1668_v42, -inf }
 0x921   :  { %1675 = vmax.xlane.f32.xlu1 %v1674_v51  ;;  %v1750_v51 = vld [vmem:[#allocation10 + $0x3d8] sm:$0xff] }
 0x932   :  { %1970 = vrot.lane.b32.xlu1 %v3354_v44, %s3248_s4 }
 0x936   :  { %1967 = vrot.lane.b32.xlu1 %v3382_v49, %s3248_s4 }
 0x9a6   :  { %v1673_v52 = vpop.xlane.xlu0 %1672 }
 0x9a7   :  { %v1677_v54 = vsub.f32 %v1665_v35, %v1673_v52  ;;  %v1751_v52 = vld [vmem:[#allocation10 + $0x3f8] sm:$0xff] }
 0x9a9   :  { %v1679_v2 = vmul.f32 1.442695, %v1677_v54  ;;  %v1748_v54 = vld [vmem:[#allocation10 + $0x398] sm:$0xff] }
 0x9aa   :  { %v1676_v50 = vpop.xlane.xlu1 %1675 }
 0x9ab   :  { %3028 = vpow2.f32 %v1679_v2  ;;  %v1678_v7 = vsub.f32 %v1668_v42, %v1676_v50  ;;  %v3589_v2 = vcombine.low %v1750_v51, %v1751_v52  ;;  %v1749_v50 = vld [vmem:[#allocation10 + $0x3b8] sm:$0xff] }
 0x9ad   :  { %v1681_v33 = vmul.f32 1.442695, %v1678_v7  ;;  %v3593_v7 = vcombine.high %v1748_v54, %v1749_v50 }
 0x9af   :  { %3030 = vpow2.f32 %v1681_v33  ;;  %v1747_v33 = vld [vmem:[#allocation10 + $0x378] sm:$0xff] }
 0x9b8   :  { %v3029_v38 = vpop.eup %3028 }
 0x9b9   :  { %v1683_v6 = vsel %vm1017_vm2, %v3029_v38, 0.0 }
 0x9ba   :  { %1684 = vadd.xlane.f32.xlu0 %v1683_v6 }
 0x9bc   :  { %v3031_v62 = vpop.eup %3030 }
 0x9bd   :  { %v1686_v4 = vsel %vm1017_vm2, %v3031_v62, 0.0 }
 0x9be   :  { %1687 = vadd.xlane.f32.xlu0 %v1686_v4 }
 0x9d4   :  { %1697 = vrot.lane.b32.xlu0 %v3503_v57, %s3248_s4  ;;  %v3591_v57 = vcombine.high %v1750_v51, %v1751_v52 }
 0x9d6   :  { %1804 = vmatprep.subr.bf16.mxu0 %v3591_v57 }
 0x9d7   :  { %1805 = vmatpush1.bf16.msra.mxu0 %v3589_v2 }
 0x9d8   :  { %v1605_v35 = vpop.f32.mrf.mxu0  ;;  %1806 = vmatprep.subr.bf16.mxu0 %v3593_v7 }
 0x9d9   :  { %v3581_v36 = vadd.f32 %v1605_v35, %v3511_v48  ;;  %v1746_v48 = vld [vmem:[#allocation10 + $0x358] sm:$0xff] }
 0x9da   :  { %v1607_v37 = vpop.f32.mrf.mxu0  ;;  %v3603_v6 = vcombine.low %v1746_v48, %v1747_v33 }
 0x9db   :  { %v3584_v41 = vadd.f32 %v1607_v37, %v3513_v0  ;;  %v3597_v0 = vcombine.low %v1748_v54, %v1749_v50 }
 0x9dc   :  { %v1609_v42 = vpop.f32.mrf.mxu0 }
 0x9dd   :  { %v3587_v43 = vadd.f32 %v1609_v42, %v3515_v5  ;;  %v3600_v5 = vcombine.high %v1746_v48, %v1747_v33  ;;  %1807 = vmatpush1.bf16.msra.mxu0 %v3597_v0 }
 0x9df   :  { %1808 = vmatprep.subr.bf16.mxu0 %v3600_v5 }
 0x9e1   :  { %1809 = vmatpush1.bf16.msra.mxu0 %v3603_v6 }
 0xa43   :  { %v1685_v4 = vpop.xlane.xlu0 %1684 }
 0xa44   :  { %3032 = vrcp.f32 %v1685_v4  ;;  %v1853_v4 = vsel %vm969_vm1, %v3354_v44, 0  ;;  %v1744_v44 = vld [vmem:[#allocation10 + $0x318] sm:$0xff] }
 0xa47   :  { %v1688_v35 = vpop.xlane.xlu0 %1687 }
 0xa48   :  { %3034 = vrcp.f32 %v1688_v35  ;;  %v936_v35 = vadd.f32 %v935_v47, %v3392_v21  ;;  %v1971_v47 = vpop.permute.xlu1 %1970 }
 0xa4b   :  { %v1698_v37 = vpop.permute.xlu0 %1697 }
 0xa4c   :  { %2922 = vmatpush3.bf16.msra.mxu1 %v1698_v37  ;;  %v940_v37 = vadd.f32 %v939_v25, %v3392_v21  ;;  %v1745_v21 = vld [vmem:[#allocation10 + $0x338] sm:$0xff] }
 0xa4d   :  { %2927 = vmatprep.subr.bf16.mxu1 %v3246_v10 }
 0xa51   :  { %v3033_v42 = vpop.eup %3032 }
 0xa52   :  { %v1691_v51 = vmul.f32 %v3033_v42, %v3029_v38  ;;  %v3618_v38 = vpack.c.bf16 %v940_v37, %v936_v35 }
 0xa54   :  { %v1693_v50 = vmul.f32 %v1691_v51, %v3397_v59  ;;  %v3626_v59 = vcombine.high %v1744_v44, %v1745_v21 }
 0xa55   :  { %v3035_v52 = vpop.eup %3034 }
 0xa56   :  { %v1692_v54 = vmul.f32 %v3035_v52, %v3031_v62  ;;  %1810 = vmatprep.subr.bf16.mxu0 %v3626_v59  ;;  %v3633_v52 = vld [vmem:[#allocation8 + $0x10] sm:$0xff] }
 0xa58   :  { %v1694_v48 = vmul.f32 %v1692_v54, %v3399_v60  ;;  %v3628_v60 = vcombine.low %v1744_v44, %v1745_v21  ;;  %v1976_v54 = vsel %vm969_vm1, %v1971_v47, 0  ;;  %v1968_v21 = vpop.permute.xlu1 %1967 }
 0xa5a   :  { %v1695_v33 = vpack.c.bf16 %v1694_v48, %v1693_v50  ;;  %1811 = vmatpush1.bf16.msra.mxu0 %v3628_v60 }
 0xa5b   :  { %2939 = vmatprep.subr.bf16.mxu0 %v3246_v10 }
 0xa5c   :  { %2924 = vmatmul.mubr.msk.bf16.vlgmr.msra.gmra.mxu1 %vm1017_vm2, %v1695_v33 }
 0xa5d   :  { %2928 = vmatpush3.bf16.xpose.msra.mxu1 %v1853_v4  ;;  %2929 = vmatprep.mubr.msk.bf16.mxu1 %vm3247_vm0, %v3246_v10  ;;  %v3641_v4 = vld [vmem:[#allocation8 + $0x18] sm:$0xff] }
 0xa5e   :  { %2933 = vmatprep.subr.bf16.mxu1 %v3246_v10 }
 0xa64   :  { %2930 = vmatmul.mubr.msk.bf16.vlgmr.msra.gmra.mxu1 %vm969_vm1, %v3382_v49 }
 0xa65   :  { %2934 = vmatpush3.bf16.msra.mxu1 %v3618_v38  ;;  %2935 = vmatprep.mubr.msk.bf16.mxu1 %vm3247_vm0, %v3246_v10 }
 0xa66   :  { %2945 = vmatprep.subr.bf16.mxu1 %v3246_v10 }
 0xb1c   :  { %v1737_v49 = vpop.f32.mrf.mxu1 }
 0xb1e   :  { %v2925_v62 = vpop.f32.mrf.mxu1 }
 0xb20   :  { %v1740_v25 = vpop.f32.mrf.mxu1 }
 0xb21   :  { %v1752_v42 = vpack.c.bf16 %v1740_v25, %v1737_v49 }
 0xb22   :  { %v2926_v51 = vpop.f32.mrf.mxu1 }
 0xb23   :  { %2834 = vmatmul.mubr.msk.bf16.vlgmr.msra.gmra.mxu0 %vm969_vm1, %v1752_v42  ;;  %v1611_v51 = vpop.f32.mrf.mxu0 }
 0xb24   :  { %2940 = vmatpush3.bf16.xpose.msra.mxu0 %v1976_v54  ;;  %v1889_v50 = vpop.f32.mrf.mxu1  ;;  %2941 = vmatprep.mubr.msk.bf16.mxu0 %vm3247_vm0, %v3246_v10 }
 0xb25   :  { %v1890_v48 = vadd.f32 %v1889_v50, %v3633_v52  ;;  %2104 = vmatprep.subr.bf16.mxu0 %v3432_v55 }
 0xb26   :  { %v2931_v33 = vpop.f32.mrf.mxu1 }
 0xb27   :  { %v1896_v35 = vsel %vm1017_vm2, %v1890_v48, -inf  ;;  %v1617_v33 = vadd.f32 %v1611_v51, %v3517_v17 }
 0xb28   :  { %1897 = vmax.xlane.f32.xlu0 %v1896_v35  ;;  %v1892_v37 = vpop.f32.mrf.mxu1 }
 0xb29   :  { %v1893_v44 = vadd.f32 %v1892_v37, %v3641_v4 }
 0xb2a   :  { %v2932_v49 = vpop.f32.mrf.mxu1 }
 0xb2b   :  { %2942 = vmatmul.mubr.msk.bf16.vlgmr.msra.gmra.mxu0 %vm969_vm1, %v1968_v21  ;;  %v1899_v62 = vsel %vm1017_vm2, %v1893_v44, -inf }
 0xb2c   :  { %1900 = vmax.xlane.f32.xlu1 %v1899_v62  ;;  %2105 = vmatpush1.bf16.msra.mxu0 %v3437_v63 }
 0xb2d   :  { %2106 = vmatprep.subr.bf16.mxu0 %v3439_v3  ;;  %2128 = vmatprep.mubr.bf16.mxu0 %v3249_v28 }
 0xb30   :  { %2107 = vmatpush1.bf16.msra.mxu0 %v3443_v8 }
 0xb31   :  { %2108 = vmatprep.subr.bf16.mxu0 %v3446_v12 }
 0xb34   :  { %2109 = vmatpush1.bf16.msra.mxu0 %v3449_v14 }
 0xb35   :  { %2110 = vmatprep.subr.bf16.mxu0 %v3453_v19 }
 0xb38   :  { %2111 = vmatpush1.bf16.msra.mxu0 %v3455_v20 }
 0xb39   :  { %2951 = vmatprep.subr.bf16.mxu0 %v3246_v10 }
 0xbb1   :  { %v1898_v42 = vpop.xlane.xlu0 %1897 }
 0xbb2   :  { %v1902_v8 = vsub.f32 %v1890_v48, %v1898_v42 }
 0xbb4   :  { %v1904_v12 = vmul.f32 1.442695, %v1902_v8 }
 0xbb5   :  { %v1901_v55 = vpop.xlane.xlu1 %1900 }
 0xbb6   :  { %v1903_v47 = vsub.f32 %v1893_v44, %v1901_v55 }
 0xbb8   :  { %v1906_v25 = vmul.f32 1.442695, %v1903_v47 }
 0xbba   :  { %3036 = vpow2.f32 %v1906_v25 }
 0xbbb   :  { %3038 = vpow2.f32 %v1904_v12 }
 0xbc7   :  { %v3037_v63 = vpop.eup %3036 }
 0xbc8   :  { %v1911_v3 = vsel %vm1017_vm2, %v3037_v63, 0.0  ;;  %v3039_v17 = vpop.eup %3038 }
 0xbc9   :  { %1912 = vadd.xlane.f32.xlu1 %v1911_v3 }
 0xbe3   :  { %v1830_v54 = vpop.f32.mrf.mxu0 }
 0xbe4   :  { %v3658_v14 = vadd.f32 %v1830_v54, %v3581_v36 }
 0xbe5   :  { %v1832_v19 = vpop.f32.mrf.mxu0 }
 0xbe6   :  { %v3661_v20 = vadd.f32 %v1832_v19, %v3584_v41 }
 0xbe7   :  { %v1834_v50 = vpop.f32.mrf.mxu0 }
 0xbe8   :  { %v3665_v35 = vadd.f32 %v1834_v50, %v3587_v43  ;;  %v1908_v43 = vsel %vm1017_vm2, %v3039_v17, 0.0 }
 0xbe9   :  { %v1836_v37 = vpop.f32.mrf.mxu0 }
 0xbea   :  { %v3667_v44 = vadd.f32 %v1836_v37, %v1617_v33 }
 0xbeb   :  { %v2012_v48 = vpop.f32.mrf.mxu0 }
 0xbec   :  { %v2013_v21 = vadd.f32 %v2012_v48, %v3633_v52 }
 0xbed   :  { %v2943_v49 = vpop.f32.mrf.mxu0 }
 0xbee   :  { %v2019_v36 = vsel %vm1017_vm2, %v2013_v21, -inf }
 0xbef   :  { %v2015_v62 = vpop.f32.mrf.mxu0  ;;  %2020 = vmax.xlane.f32.xlu0 %v2019_v36 }
 0xbf0   :  { %v2016_v41 = vadd.f32 %v2015_v62, %v3641_v4  ;;  %v3676_v62 = vld [vmem:[#allocation8 + $0x30] sm:$0xff] }
 0xbf1   :  { %v2944_v55 = vpop.f32.mrf.mxu0 }
 0xbf2   :  { %v2022_v47 = vsel %vm1017_vm2, %v2016_v41, -inf  ;;  %v3678_v55 = vld [vmem:[#allocation8 + $0x38] sm:$0xff] }
 0xbf3   :  { %2023 = vmax.xlane.f32.xlu0 %v2022_v47 }
 0xbf7   :  { %1909 = vadd.xlane.f32.xlu0 %v1908_v43 }
 0xc52   :  { %v1913_v42 = vpop.xlane.xlu1 %1912 }
 0xc78   :  { %v2021_v25 = vpop.xlane.xlu0 %2020 }
 0xc79   :  { %v2025_v3 = vsub.f32 %v2013_v21, %v2021_v25 }
 0xc7b   :  { %v2027_v8 = vmul.f32 1.442695, %v2025_v3 }
 0xc7c   :  { %v2024_v51 = vpop.xlane.xlu0 %2023 }
 0xc7d   :  { %3040 = vpow2.f32 %v2027_v8  ;;  %v2026_v12 = vsub.f32 %v2016_v41, %v2024_v51 }
 0xc7e   :  { %3042 = vrcp.f32 %v1913_v42 }
 0xc7f   :  { %v2029_v54 = vmul.f32 1.442695, %v2026_v12 }
 0xc80   :  { %v1910_v19 = vpop.xlane.xlu0 %1909 }
 0xc81   :  { %3044 = vpow2.f32 %v2029_v54 }
 0xc82   :  { %3046 = vrcp.f32 %v1910_v19 }
 0xc8a   :  { %v3041_v50 = vpop.eup %3040 }
 0xc8b   :  { %v3043_v33 = vpop.eup %3042  ;;  %v2031_v37 = vsel %vm1017_vm2, %v3041_v50, 0.0 }
 0xc8c   :  { %2032 = vadd.xlane.f32.xlu0 %v2031_v37  ;;  %v1917_v49 = vmul.f32 %v3043_v33, %v3037_v63 }
 0xc8e   :  { %v3045_v48 = vpop.eup %3044  ;;  %v1919_v43 = vmul.f32 %v1917_v49, %v3678_v55 }
 0xc8f   :  { %v3047_v36 = vpop.eup %3046  ;;  %v2034_v21 = vsel %vm1017_vm2, %v3045_v48, 0.0 }
 0xc90   :  { %v1916_v41 = vmul.f32 %v3047_v36, %v3039_v17  ;;  %2035 = vadd.xlane.f32.xlu1 %v2034_v21 }
 0xc92   :  { %v1918_v47 = vmul.f32 %v1916_v41, %v3676_v62 }
 0xc94   :  { %v1920_v25 = vpack.c.bf16 %v1919_v43, %v1918_v47 }
 0xc96   :  { %2936 = vmatmul.mubr.msk.bf16.vlgmr.msra.gmra.mxu1 %vm1017_vm2, %v1920_v25 }
 0xc97   :  { %2947 = vmatprep.mubr.msk.bf16.mxu1 %vm3247_vm0, %v3246_v10 }
 0xca2   :  { %2045 = vrot.lane.b32.xlu0 %v3618_v38, %s3248_s4 }
 0xca6   :  { %2353 = vrot.lane.b32.xlu0 %v3384_v16, %s3248_s4 }
 0xd15   :  { %v2033_v63 = vpop.xlane.xlu0 %2032 }
 0xd16   :  { %3048 = vrcp.f32 %v2033_v63 }
 0xd19   :  { %v2046_v17 = vpop.permute.xlu0 %2045  ;;  %v2036_v3 = vpop.xlane.xlu1 %2035 }
 0xd1a   :  { %3050 = vrcp.f32 %v2036_v3  ;;  %2946 = vmatpush3.bf16.msra.mxu1 %v2046_v17 }
 0xd1b   :  { %2150 = vmatprep.subr.bf16.mxu1 %v3459_v26 }
 0xd23   :  { %v3049_v42 = vpop.eup %3048 }
 0xd24   :  { %v2039_v8 = vmul.f32 %v3049_v42, %v3041_v50  ;;  %v942_v50 = vadd.f32 %v3578_v32, %v3489_v29 }
 0xd26   :  { %v2041_v54 = vmul.f32 %v2039_v8, %v3676_v62 }
 0xd27   :  { %v3051_v51 = vpop.eup %3050 }
 0xd28   :  { %v2040_v12 = vmul.f32 %v3051_v51, %v3045_v48 }
 0xd2a   :  { %v2042_v19 = vmul.f32 %v2040_v12, %v3678_v55 }
 0xd2c   :  { %v2043_v38 = vpack.c.bf16 %v2042_v19, %v2041_v54 }
 0xd2e   :  { %2948 = vmatmul.mubr.msk.bf16.vlgmr.msra.gmra.mxu1 %vm1017_vm2, %v2043_v38 }
 0xd2f   :  { %2151 = vmatpush1.bf16.msra.mxu1 %v3461_v27  ;;  %2174 = vmatprep.mubr.bf16.mxu1 %v3249_v28  ;;  %v938_v27 = vadd.f32 %v3574_v24, %v3489_v29 }
 0xd30   :  { %2152 = vmatprep.subr.bf16.mxu1 %v3465_v39 }
 0xd31   :  { %v3706_v37 = vpack.c.bf16 %v942_v50, %v938_v27 }
 0xd33   :  { %2153 = vmatpush1.bf16.msra.mxu1 %v3469_v45 }
 0xd34   :  { %2154 = vmatprep.subr.bf16.mxu1 %v3473_v46 }
 0xd37   :  { %2155 = vmatpush1.bf16.msra.mxu1 %v3476_v53  ;;  %v662_v53 = vadd.f32 %v3352_v40, %v3331_v22 }
 0xd38   :  { %2156 = vmatprep.subr.bf16.mxu1 %v3479_v56  ;;  %v666_v56 = vadd.f32 %v3356_v1, %v3331_v22 }
 0xd3a   :  { %v959_v24 = vpack.c.bf16 %v666_v56, %v662_v53 }
 0xd3b   :  { %2157 = vmatpush1.bf16.msra.mxu1 %v3482_v23 }
 0xd3c   :  { %2957 = vmatprep.subr.bf16.mxu1 %v3246_v10  ;;  %v2189_v36 = vsel %vm969_vm1, %v959_v24, 0 }
 0xd56   :  { %v1958_v26 = vpop.f32.mrf.mxu1 }
 0xd58   :  { %v2937_v39 = vpop.f32.mrf.mxu1 }
 0xd5a   :  { %v1961_v33 = vpop.f32.mrf.mxu1 }
 0xd5b   :  { %v1965_v45 = vpack.c.bf16 %v1961_v33, %v1958_v26 }
 0xd5c   :  { %v2938_v46 = vpop.f32.mrf.mxu1 }
 0xd5d   :  { %2840 = vmatmul.mubr.msk.bf16.vlgmr.msra.gmra.mxu1 %vm969_vm1, %v1965_v45  ;;  %v2354_v45 = vpop.permute.xlu0 %2353 }
 0xd5e   :  { %2958 = vmatpush3.bf16.msra.mxu1 %v3706_v37  ;;  %2959 = vmatprep.mubr.msk.bf16.mxu1 %vm3247_vm0, %v3246_v10 }
 0xd5f   :  { %2963 = vmatprep.subr.bf16.mxu1 %v3246_v10 }
 0xdee   :  { %v2085_v23 = vpop.f32.mrf.mxu1 }
 0xdf0   :  { %v2949_v29 = vpop.f32.mrf.mxu1 }
 0xdf2   :  { %v2088_v32 = vpop.f32.mrf.mxu1 }
 0xdf3   :  { %v2092_v48 = vpack.c.bf16 %v2088_v32, %v2085_v23 }
 0xdf4   :  { %v2950_v49 = vpop.f32.mrf.mxu1 }
 0xdf5   :  { %2839 = vmatmul.mubr.msk.bf16.vlgmr.msra.gmra.mxu0 %vm969_vm1, %v2092_v48 }
 0xdf6   :  { %2952 = vmatpush3.bf16.xpose.msra.mxu0 %v2189_v36  ;;  %2953 = vmatprep.mubr.msk.bf16.mxu0 %vm3247_vm0, %v3246_v10 }
 0xdf7   :  { %2313 = vmatprep.subr.bf16.mxu0 %v3529_v61 }
 0xdfd   :  { %2954 = vmatmul.mubr.msk.bf16.vlgmr.msra.gmra.mxu0 %vm969_vm1, %v3384_v16 }
 0xdfe   :  { %2314 = vmatpush1.bf16.msra.mxu0 %v3527_v58  ;;  %2337 = vmatprep.mubr.bf16.mxu0 %v3249_v28 }
 0xdff   :  { %2315 = vmatprep.subr.bf16.mxu0 %v3531_v18 }
 0xe02   :  { %2316 = vmatpush1.bf16.msra.mxu0 %v3535_v34 }
 0xe03   :  { %2317 = vmatprep.subr.bf16.mxu0 %v3538_v30 }
 0xe06   :  { %2318 = vmatpush1.bf16.msra.mxu0 %v3542_v31 }
 0xe07   :  { %2319 = vmatprep.subr.bf16.mxu0 %v3558_v11 }
 0xe0a   :  { %2320 = vmatpush1.bf16.msra.mxu0 %v3556_v9 }
 0xe0b   :  { %2490 = vmatprep.subr.bf16.mxu0 %v3591_v57 }
 0xe1d   :  { %v3758_v46 = vpop.f32.mrf.mxu1 }
 0xe1f   :  { %v3760_v53 = vpop.f32.mrf.mxu1 }
 0xe21   :  { %v3762_v56 = vpop.f32.mrf.mxu1 }
 0xe23   :  { %v3764_v23 = vpop.f32.mrf.mxu1 }
 0xeb5   :  { %v3733_v22 = vpop.f32.mrf.mxu0 }
 0xeb7   :  { %v3735_v40 = vpop.f32.mrf.mxu0 }
 0xeb9   :  { %v3737_v1 = vpop.f32.mrf.mxu0 }
 0xebb   :  { %v3739_v16 = vpop.f32.mrf.mxu0 }
 0xebd   :  { %v2225_v58 = vpop.f32.mrf.mxu0 }
 0xebe   :  { %v2226_v61 = vadd.f32 %v2225_v58, %v3633_v52  ;;  %v131_v58 = vld [vmem:[#allocation11 + $0x3] ss:$8 sm:$0x3] }
 0xebf   :  { %v2955_v18 = vpop.f32.mrf.mxu0 }
 0xec0   :  { %v2232_v34 = vsel %vm1017_vm2, %v2226_v61, -inf }
 0xec1   :  { %2233 = vmax.xlane.f32.xlu1 %v2232_v34  ;;  %v2228_v30 = vpop.f32.mrf.mxu0 }
 0xec2   :  { %v2229_v31 = vadd.f32 %v2228_v30, %v3641_v4  ;;  %v3773_v30 = vrot.slane %v131_v58, %v3321_v15 }
 0xec3   :  { %v2956_v9 = vpop.f32.mrf.mxu0 }
 0xec4   :  { %v2235_v11 = vsel %vm1017_vm2, %v2229_v31, -inf  ;;  %v3077_v9 = vld [vmem:[#allocation2] sm:$0xff] }
 0xec5   :  { %2236 = vmax.xlane.f32.xlu1 %v2235_v11  ;;  %v2529_v11 = vadd.f32 %v3077_v9, %v3658_v14 }
 0xf4a   :  { %v2234_v57 = vpop.xlane.xlu1 %2233 }
 0xf4b   :  { %v2238_v21 = vsub.f32 %v2226_v61, %v2234_v57  ;;  %v3076_v61 = vld [vmem:[#allocation2 + $0x8] sm:$0xff] }
 0xf4c   :  { %v2530_v18 = vadd.f32 %v3076_v61, %v3661_v20 }
 0xf4d   :  { %v2240_v41 = vmul.f32 1.442695, %v2238_v21 }
 0xf4e   :  { %v2237_v47 = vpop.xlane.xlu1 %2236  ;;  %v3785_v21 = vadd.f32 %v3773_v30, %v2530_v18  ;;  %v133_v18 = vld [vmem:[#allocation11 + $0x4] ss:$8 sm:$0x3] }
 0xf4f   :  { %3052 = vpow2.f32 %v2240_v41  ;;  %v2239_v43 = vsub.f32 %v2229_v31, %v2237_v47  ;;  %v3079_v41 = vld [vmem:[#allocation2 + $0x10] sm:$0xff]  ;;  %v3812_v9 = vrot.slane %v133_v18, %v3321_v15 }
 0xf50   :  { %v2531_v47 = vadd.f32 %v3079_v41, %v3665_v35 }
 0xf51   :  { %v2242_v25 = vmul.f32 1.442695, %v2239_v43 }
 0xf53   :  { %3054 = vpow2.f32 %v2242_v25 }
 0xf5c   :  { %v3053_v63 = vpop.eup %3052 }
 0xf5d   :  { %v2244_v17 = vsel %vm1017_vm2, %v3053_v63, 0.0 }
 0xf5e   :  { %2245 = vadd.xlane.f32.xlu1 %v2244_v17 }
 0xf60   :  { %v3055_v3 = vpop.eup %3054 }
 0xf61   :  { %v2247_v42 = vsel %vm1017_vm2, %v3055_v3, 0.0 }
 0xf62   :  { %2248 = vadd.xlane.f32.xlu1 %v2247_v42 }
 0xf73   :  { %2356 = vrot.lane.b32.xlu1 %v959_v24, %s3248_s4 }
 0xfe7   :  { %v2246_v8 = vpop.xlane.xlu1 %2245 }
 0xfe8   :  { %3056 = vrcp.f32 %v2246_v8 }
 0xfeb   :  { %v2249_v51 = vpop.xlane.xlu1 %2248 }
 0xfec   :  { %3058 = vrcp.f32 %v2249_v51 }
 0xfef   :  { %v2357_v50 = vpop.permute.xlu1 %2356 }
 0xff0   :  { %v2362_v33 = vsel %vm969_vm1, %v2357_v50, 0 }
 0xff5   :  { %v3057_v12 = vpop.eup %3056 }
 0xff6   :  { %v2252_v54 = vmul.f32 %v3057_v12, %v3053_v63 }
 0xff8   :  { %v2254_v26 = vmul.f32 %v2252_v54, %v3676_v62 }
 0xff9   :  { %v3059_v19 = vpop.eup %3058 }
 0xffa   :  { %v2253_v38 = vmul.f32 %v3059_v19, %v3055_v3 }
 0xffc   :  { %v2255_v27 = vmul.f32 %v2253_v38, %v3678_v55 }
 0xffe   :  { %v2256_v39 = vpack.c.bf16 %v2255_v27, %v2254_v26 }
0x1000   :  { %2960 = vmatmul.mubr.msk.bf16.vlgmr.msra.gmra.mxu1 %vm1017_vm2, %v2256_v39 }
0x1001   :  { %2964 = vmatpush3.bf16.xpose.msra.mxu1 %v2362_v33  ;;  %2965 = vmatprep.mubr.msk.bf16.mxu1 %vm3247_vm0, %v3246_v10 }
0x1002   :  { %2969 = vmatprep.subr.bf16.mxu1 %v3246_v10 }
0x1008   :  { %2966 = vmatmul.mubr.msk.bf16.vlgmr.msra.gmra.mxu1 %vm969_vm1, %v2354_v45 }
0x1009   :  { %2971 = vmatprep.mubr.msk.bf16.mxu1 %vm3247_vm0, %v3246_v10 }
0x10c0   :  { %v2294_v29 = vpop.f32.mrf.mxu1 }
0x10c2   :  { %v2961_v24 = vpop.f32.mrf.mxu1 }
0x10c4   :  { %v2297_v32 = vpop.f32.mrf.mxu1 }
0x10c5   :  { %v2301_v48 = vpack.c.bf16 %v2297_v32, %v2294_v29 }
0x10c6   :  { %v2962_v49 = vpop.f32.mrf.mxu1 }
0x10c7   :  { %2843 = vmatmul.mubr.msk.bf16.vlgmr.msra.gmra.mxu0 %vm969_vm1, %v2301_v48 }
0x10c8   :  { %v2398_v36 = vpop.f32.mrf.mxu1  ;;  %2491 = vmatpush1.bf16.msra.mxu0 %v3589_v2  ;;  %2514 = vmatprep.mubr.bf16.mxu0 %v3249_v28  ;;  %v3778_v28 = vrot.slane %v131_v58, %v3319_v13 }
0x10c9   :  { %v2399_v10 = vadd.f32 %v2398_v36, %v3633_v52  ;;  %2492 = vmatprep.subr.bf16.mxu0 %v3593_v7  ;;  %v3078_v52 = vld [vmem:[#allocation2 + $0x18] sm:$0xff] }
0x10ca   :  { %v2967_v34 = vpop.f32.mrf.mxu1  ;;  %v2532_v20 = vadd.f32 %v3078_v52, %v3667_v44  ;;  %v3790_v43 = vadd.f32 %v3778_v28, %v2529_v11 }
0x10cb   :  { %v2405_v31 = vsel %vm1017_vm2, %v2399_v10, -inf  ;;  %v135_v34 = vld [vmem:[#allocation11 + $0x5] ss:$8 sm:$0x3] }
0x10cc   :  { %2406 = vmax.xlane.f32.xlu0 %v2405_v31  ;;  %v2401_v2 = vpop.f32.mrf.mxu1  ;;  %2493 = vmatpush1.bf16.msra.mxu0 %v3597_v0  ;;  %v2556_v0 = vadd.f32 %v3785_v21, %v3790_v43  ;;  %v3809_v31 = vrot.slane %v133_v18, %v3319_v13 }
0x10cd   :  { %v2402_v7 = vadd.f32 %v2401_v2, %v3641_v4  ;;  %2494 = vmatprep.subr.bf16.mxu0 %v3600_v5  ;;  %v2551_v5 = vadd.f32 %v3773_v30, %v2532_v20  ;;  %v2550_v4 = vadd.f32 %v3778_v28, %v2531_v47 }
0x10ce   :  { %v2968_v57 = vpop.f32.mrf.mxu1 }
0x10cf   :  { %v2408_v14 = vsel %vm1017_vm2, %v2402_v7, -inf  ;;  %v2559_v44 = vadd.f32 %v2551_v5, %v2550_v4 }
0x10d0   :  { %2409 = vmax.xlane.f32.xlu1 %v2408_v14  ;;  %2495 = vmatpush1.bf16.msra.mxu0 %v3603_v6 }
0x10d1   :  { %2496 = vmatprep.subr.bf16.mxu0 %v3626_v59 }
0x10d4   :  { %2557 = vadd.xlane.f32.xlu1 %v2556_v0  ;;  %2497 = vmatpush1.bf16.msra.mxu0 %v3628_v60 }
0x10d8   :  { %2560 = vadd.xlane.f32.xlu1 %v2559_v44 }
0x1155   :  { %v2407_v35 = vpop.xlane.xlu0 %2406 }
0x1156   :  { %v2411_v25 = vsub.f32 %v2399_v10, %v2407_v35  ;;  %v2177_v35 = vadd.f32 %v3758_v46, %v3733_v22 }
0x1158   :  { %v2413_v63 = vmul.f32 1.442695, %v2411_v25 }
0x1159   :  { %v2410_v17 = vpop.xlane.xlu1 %2409 }
0x115a   :  { %3060 = vpow2.f32 %v2413_v63  ;;  %v2412_v6 = vsub.f32 %v2402_v7, %v2410_v17  ;;  %v2179_v63 = vadd.f32 %v3760_v53, %v3735_v40  ;;  %v3081_v40 = vld [vmem:[#allocation2 + $0x28] sm:$0xff] }
0x115c   :  { %v2415_v3 = vmul.f32 1.442695, %v2412_v6 }
0x115d   :  { %v3803_v60 = vpop.xlane.xlu1 %2557 }
0x115e   :  { %3062 = vpow2.f32 %v2415_v3  ;;  %v2181_v3 = vadd.f32 %v3762_v56, %v3737_v1  ;;  %v2569_v46 = vmul.f32 0.00390625, %v3803_v60 }
0x1161   :  { %v2561_v12 = vpop.xlane.xlu1 %2560 }
0x1162   :  { %v2570_v54 = vmul.f32 0.00390625, %v2561_v12 }
0x1164   :  { %v2575_v19 = vsub.f32 %v2550_v4, %v2570_v54  ;;  %v2576_v38 = vsub.f32 %v2551_v5, %v2570_v54  ;;  %v3080_v54 = vld [vmem:[#allocation2 + $0x20] sm:$0xff] }
0x1166   :  { %v2583_v26 = vmul.f32 %v2575_v19, %v2575_v19  ;;  %v2584_v27 = vmul.f32 %v2576_v38, %v2576_v38 }
0x1167   :  { %v3061_v59 = vpop.eup %3060 }
0x1168   :  { %v2417_v42 = vsel %vm1017_vm2, %v3061_v59, 0.0  ;;  %v2592_v50 = vadd.f32 %v2584_v27, %v2583_v26 }
0x1169   :  { %2418 = vadd.xlane.f32.xlu0 %v2417_v42 }
0x116b   :  { %v3063_v8 = vpop.eup %3062 }
0x116c   :  { %v2420_v51 = vsel %vm1017_vm2, %v3063_v8, 0.0 }
0x116d   :  { %2421 = vadd.xlane.f32.xlu0 %v2420_v51  ;;  %v2183_v51 = vadd.f32 %v3764_v23, %v3739_v16  ;;  %v2573_v16 = vsub.f32 %v3790_v43, %v2569_v46  ;;  %v2574_v23 = vsub.f32 %v3785_v21, %v2569_v46 }
0x1183   :  { %2431 = vrot.lane.b32.xlu0 %v3706_v37, %s3248_s4 }
0x11a2   :  { %2593 = vadd.xlane.f32.xlu0 %v2592_v50 }
0x11f2   :  { %v2419_v39 = vpop.xlane.xlu0 %2418 }
0x11f3   :  { %3064 = vrcp.f32 %v2419_v39  ;;  %v3082_v39 = vld [vmem:[#allocation2 + $0x30] sm:$0xff] }
0x11f6   :  { %v2422_v33 = vpop.xlane.xlu0 %2421 }
0x11f7   :  { %3066 = vrcp.f32 %v2422_v33 }
0x11fa   :  { %v2432_v45 = vpop.permute.xlu0 %2431 }
0x11fb   :  { %2970 = vmatpush3.bf16.msra.mxu1 %v2432_v45 }
0x1200   :  { %v3065_v29 = vpop.eup %3064 }
0x1201   :  { %v2425_v24 = vmul.f32 %v3065_v29, %v3061_v59  ;;  %v3083_v29 = vld [vmem:[#allocation2 + $0x38] sm:$0xff] }
0x1203   :  { %v2427_v48 = vmul.f32 %v2425_v24, %v3676_v62  ;;  %v3815_v62 = vrot.slane %v135_v34, %v3319_v13 }
0x1204   :  { %v3067_v32 = vpop.eup %3066 }
0x1205   :  { %v2426_v37 = vmul.f32 %v3067_v32, %v3063_v8 }
0x1207   :  { %v2428_v49 = vmul.f32 %v2426_v37, %v3678_v55  ;;  %v3818_v55 = vrot.slane %v135_v34, %v3321_v15  ;;  %v2339_v15 = vpop.f32.mrf.mxu0 }
0x1208   :  { %v2348_v17 = vadd.f32 %v2339_v15, %v2177_v35 }
0x1209   :  { %v2429_v36 = vpack.c.bf16 %v2428_v49, %v2427_v48  ;;  %v2341_v4 = vpop.f32.mrf.mxu0  ;;  %v2581_v49 = vmul.f32 %v2573_v16, %v2573_v16 }
0x120a   :  { %v2349_v59 = vadd.f32 %v2341_v4, %v2179_v63 }
0x120b   :  { %2972 = vmatmul.mubr.msk.bf16.vlgmr.msra.gmra.mxu1 %vm1017_vm2, %v2429_v36  ;;  %v2343_v44 = vpop.f32.mrf.mxu0  ;;  %v2582_v36 = vmul.f32 %v2574_v23, %v2574_v23 }
0x120c   :  { %v2350_v12 = vadd.f32 %v2343_v44, %v2181_v3 }
0x120d   :  { %v2345_v25 = vpop.f32.mrf.mxu0 }
0x120e   :  { %v2351_v26 = vadd.f32 %v2345_v25, %v2183_v51 }
0x122b   :  { %v2594_v10 = vpop.xlane.xlu0 %2593 }
0x122c   :  { %v2602_v58 = vmul.f32 0.00390625, %v2594_v10  ;;  %v2589_v10 = vadd.f32 %v2582_v36, %v2581_v49 }
0x122e   :  { %v2606_v61 = vadd.f32 1e-05, %v2602_v58 }
0x1230   :  { %3068 = vrsqrt.f32 %v2606_v61 }
0x123d   :  { %v3069_v11 = vpop.eup %3068 }
0x123e   :  { %v2615_v2 = vmul.f32 %v3069_v11, %v2575_v19  ;;  %v2616_v7 = vmul.f32 %v3069_v11, %v2576_v38 }
0x1240   :  { %v2634_v52 = vmul.f32 %v3809_v31, %v2615_v2  ;;  %v2635_v20 = vmul.f32 %v3812_v9, %v2616_v7 }
0x1242   :  { %v2653_v57 = vadd.f32 %v3815_v62, %v2634_v52  ;;  %v2654_v14 = vadd.f32 %v3818_v55, %v2635_v20 }
0x1244   :  { %2661 = vst [vmem:[#allocation13 + $0x10] sm:$0xff] %v2653_v57  ;;  %2662 = vst [vmem:[#allocation13 + $0x18] sm:$0xff] %v2654_v14 }
0x12cb   :  { %v2471_v41 = vpop.f32.mrf.mxu1 }
0x12cd   :  { %v2973_v47 = vpop.f32.mrf.mxu1 }
0x12cf   :  { %v2474_v0 = vpop.f32.mrf.mxu1 }
0x12d0   :  { %v2478_v13 = vpack.c.bf16 %v2474_v0, %v2471_v41 }
0x12d1   :  { %v2974_v5 = vpop.f32.mrf.mxu1 }
0x12d2   :  { %2846 = vmatmul.mubr.msk.bf16.vlgmr.msra.gmra.mxu0 %vm969_vm1, %v2478_v13 }
0x1392   :  { %v2516_v6 = vpop.f32.mrf.mxu0 }
0x1393   :  { %v2525_v42 = vadd.f32 %v2516_v6, %v2348_v17 }
0x1394   :  { %v2518_v8 = vpop.f32.mrf.mxu0 }
0x1395   :  { %v2533_v19 = vadd.f32 %v3080_v54, %v2525_v42  ;;  %v2526_v38 = vadd.f32 %v2518_v8, %v2349_v59 }
0x1396   :  { %v2520_v22 = vpop.f32.mrf.mxu0 }
0x1397   :  { %v2534_v53 = vadd.f32 %v3081_v40, %v2526_v38  ;;  %v2527_v27 = vadd.f32 %v2520_v22, %v2350_v12  ;;  %v2552_v33 = vadd.f32 %v3778_v28, %v2533_v19 }
0x1398   :  { %v2522_v50 = vpop.f32.mrf.mxu0 }
0x1399   :  { %v2535_v1 = vadd.f32 %v3082_v39, %v2527_v27  ;;  %v2528_v56 = vadd.f32 %v2522_v50, %v2351_v26  ;;  %v2553_v45 = vadd.f32 %v3773_v30, %v2534_v53 }
0x139b   :  { %v2536_v24 = vadd.f32 %v3083_v29, %v2528_v56  ;;  %v2562_v32 = vadd.f32 %v2553_v45, %v2552_v33  ;;  %v2554_v60 = vadd.f32 %v3778_v28, %v2535_v1 }
0x139d   :  { %2563 = vadd.xlane.f32.xlu1 %v2562_v32  ;;  %v2555_v37 = vadd.f32 %v3773_v30, %v2536_v24 }
0x139f   :  { %v2565_v48 = vadd.f32 %v2555_v37, %v2554_v60 }
0x13a1   :  { %2566 = vadd.xlane.f32.xlu1 %v2565_v48 }
0x13a5   :  { %2590 = vadd.xlane.f32.xlu1 %v2589_v10 }
0x1426   :  { %v2564_v58 = vpop.xlane.xlu1 %2563 }
0x1427   :  { %v2571_v61 = vmul.f32 0.00390625, %v2564_v58 }
0x1429   :  { %v2577_v18 = vsub.f32 %v2552_v33, %v2571_v61  ;;  %v2578_v43 = vsub.f32 %v2553_v45, %v2571_v61 }
0x142a   :  { %v2567_v34 = vpop.xlane.xlu1 %2566 }
0x142b   :  { %v2572_v21 = vmul.f32 0.00390625, %v2567_v34  ;;  %v2585_v11 = vmul.f32 %v2577_v18, %v2577_v18  ;;  %v2586_v2 = vmul.f32 %v2578_v43, %v2578_v43 }
0x142d   :  { %v2579_v7 = vsub.f32 %v2554_v60, %v2572_v21  ;;  %v2580_v52 = vsub.f32 %v2555_v37, %v2572_v21  ;;  %v2595_v20 = vadd.f32 %v2586_v2, %v2585_v11 }
0x142e   :  { %v2591_v28 = vpop.xlane.xlu1 %2590 }
0x142f   :  { %v2601_v57 = vmul.f32 0.00390625, %v2591_v28  ;;  %2596 = vadd.xlane.f32.xlu1 %v2595_v20  ;;  %v2587_v30 = vmul.f32 %v2579_v7, %v2579_v7  ;;  %v2588_v14 = vmul.f32 %v2580_v52, %v2580_v52 }
0x1431   :  { %v2605_v41 = vadd.f32 1e-05, %v2601_v57  ;;  %v2598_v47 = vadd.f32 %v2588_v14, %v2587_v30 }
0x1433   :  { %3070 = vrsqrt.f32 %v2605_v41  ;;  %2599 = vadd.xlane.f32.xlu1 %v2598_v47 }
0x1440   :  { %v3071_v0 = vpop.eup %3070 }
0x1441   :  { %v2613_v13 = vmul.f32 %v3071_v0, %v2573_v16  ;;  %v2614_v5 = vmul.f32 %v3071_v0, %v2574_v23 }
0x1443   :  { %v2632_v15 = vmul.f32 %v3809_v31, %v2613_v13  ;;  %v2633_v4 = vmul.f32 %v3812_v9, %v2614_v5 }
0x1445   :  { %v2651_v44 = vadd.f32 %v3815_v62, %v2632_v15  ;;  %v2652_v35 = vadd.f32 %v3818_v55, %v2633_v4 }
0x1447   :  { %2659 = vst [vmem:[#allocation13] sm:$0xff] %v2651_v44  ;;  %2660 = vst [vmem:[#allocation13 + $0x8] sm:$0xff] %v2652_v35 }
0x14b8   :  { %v2597_v25 = vpop.xlane.xlu1 %2596 }
0x14b9   :  { %v2603_v63 = vmul.f32 0.00390625, %v2597_v25 }
0x14bb   :  { %v2607_v17 = vadd.f32 1e-05, %v2603_v63 }
0x14bc   :  { %v2600_v6 = vpop.xlane.xlu1 %2599 }
0x14bd   :  { %3072 = vrsqrt.f32 %v2607_v17  ;;  %v2604_v3 = vmul.f32 0.00390625, %v2600_v6 }
0x14bf   :  { %v2608_v59 = vadd.f32 1e-05, %v2604_v3 }
0x14c1   :  { %3074 = vrsqrt.f32 %v2608_v59 }
0x14ca   :  { %v3073_v42 = vpop.eup %3072 }
0x14cb   :  { %v2617_v8 = vmul.f32 %v3073_v42, %v2577_v18  ;;  %v2618_v51 = vmul.f32 %v3073_v42, %v2578_v43 }
0x14cd   :  { %v2636_v12 = vmul.f32 %v3809_v31, %v2617_v8  ;;  %v2637_v54 = vmul.f32 %v3812_v9, %v2618_v51 }
0x14ce   :  { %v3075_v19 = vpop.eup %3074 }
0x14cf   :  { %v2655_v38 = vadd.f32 %v3815_v62, %v2636_v12  ;;  %v2656_v22 = vadd.f32 %v3818_v55, %v2637_v54  ;;  %v2619_v46 = vmul.f32 %v3075_v19, %v2579_v7  ;;  %v2620_v26 = vmul.f32 %v3075_v19, %v2580_v52 }
0x14d1   :  { %2663 = vst [vmem:[#allocation13 + $0x20] sm:$0xff] %v2655_v38  ;;  %2664 = vst [vmem:[#allocation13 + $0x28] sm:$0xff] %v2656_v22  ;;  %v2638_v40 = vmul.f32 %v3809_v31, %v2619_v46  ;;  %v2639_v53 = vmul.f32 %v3812_v9, %v2620_v26 }
0x14d3   :  { %v2657_v27 = vadd.f32 %v3815_v62, %v2638_v40  ;;  %v2658_v50 = vadd.f32 %v3818_v55, %v2639_v53 }
0x14d5   :  { %2665 = vst [vmem:[#allocation13 + $0x30] sm:$0xff] %v2657_v27  ;;  %2666 = vst [vmem:[#allocation13 + $0x38] sm:$0xff] %v2658_v50 }
0x14d6   :  { %3215 = shalt.err (!%p3212_p6)
}
0x14d7   :  { %2678 = dma.vmem_to_hbm [thread:$0]  %s2673_s25, 1024, %s3864_s6, [#allocation4], %s3239_s11, %s3239_s11, %s3240_s12  }
0x14d8   :  { %3232 = dma.done.wait [#allocation4], 1024  }
0x14d9   :  { %3233 = vsyncadd [#allocation4], 4294966272 }
0x14da   :  { %2682 = vsyncpa [#allocation3], 1 }
0x14db   :  { %2683 = vsyncpa [#allocation6], 1 }
0x14dc   :  { %2684 = vsyncpa [#allocation9], 1 }
0x14dd   :  { %2685 = vsyncpa [#allocation12], 1 }
0x14de   :  { %2686 = vsyncpa [#allocation4], 1 }

</bundles_post_ra>
